<compile_context>
chip_gen: v7x
topology: tpu7x:2x2x1
jax: 0.10.0
libtpu: 0.0.40
codegen_flags: <defaults>
</compile_context>

<pallas_src>
import functools

import jax
import jax.numpy as jnp
from jax import lax
from jax.experimental import pallas as pl
from jax.experimental.pallas import tpu as pltpu


_LANE = 128
_NEG_INF = -1e30          # finite "-inf" for masked scores (avoids inf-inf NaNs)


def _round_up(x, m):
    return (x + m - 1) // m * m


def _vmem_limit_bytes(*buffers):
    """Double-buffered working set + headroom, capped at 48 MiB (v7x phys = 64 MiB)."""
    est = 2 * sum(buffers) + (8 << 20)
    return int(min(max(est, 16 << 20), 48 << 20))


def _choose_tiles(n):
    """Return (tq, tkv, n_pad).  Production tiles sized for v7x's 64 MiB VMEM
    (comfortable on v5e/v6e's 128 MiB); tiny sequences use a single tile."""
    n8 = _round_up(max(n, 8), 8)
    if n8 <= 512:
        return n8, n8, n8
    tq, tkv = 256, 512
    return tq, tkv, _round_up(n, tkv)


# --------------------------- Stage 1: fused QKV projection ---------------------
def _qkv_proj_kernel(x_ref, w_ref, q_ref, k_ref, v_ref, *, heads):
    # x_ref:   (1, tn, d_pad)          bf16
    # w_ref:   (3, heads, d_pad, dh)   bf16, VMEM-resident (Q weights pre-scaled)
    # q/k/v_ref: (1, heads, tn, dh)    bf16, head-major for stage 2
    x = x_ref[0]
    for h in range(heads):            # static unroll: leading-axis weight indexing,
        q_ref[0, h] = jnp.dot(        # no lane slicing, no f32 (tn, 3*dh) intermediate
            x, w_ref[0, h], preferred_element_type=jnp.float32).astype(jnp.bfloat16)
        k_ref[0, h] = jnp.dot(
            x, w_ref[1, h], preferred_element_type=jnp.float32).astype(jnp.bfloat16)
        v_ref[0, h] = jnp.dot(
            x, w_ref[2, h], preferred_element_type=jnp.float32).astype(jnp.bfloat16)


def _qkv_projection(x_pad, w_qkv, *, heads, dim_head, tile_n):
    b, n_pad, d_pad = x_pad.shape
    out_sd = jax.ShapeDtypeStruct((b, heads, n_pad, dim_head), jnp.bfloat16)

    def out_spec():
        return pl.BlockSpec((1, heads, tile_n, dim_head),
                            lambda bi, ni: (bi, 0, ni, 0))

    vmem = _vmem_limit_bytes(
        tile_n * d_pad * 2,                       # x tile
        3 * heads * d_pad * dim_head * 2,         # resident weights
        3 * heads * tile_n * dim_head * 2)        # q/k/v output tiles
    return pl.pallas_call(
        functools.partial(_qkv_proj_kernel, heads=heads),
        out_shape=(out_sd, out_sd, out_sd),
        grid_spec=pltpu.PrefetchScalarGridSpec(
            num_scalar_prefetch=0,
            grid=(b, n_pad // tile_n),
            in_specs=[
                pl.BlockSpec((1, tile_n, d_pad), lambda bi, ni: (bi, ni, 0)),
                # whole array, constant block index -> fetched once, stays resident
                pl.BlockSpec((3, heads, d_pad, dim_head),
                             lambda bi, ni: (0, 0, 0, 0)),
            ],
            out_specs=[out_spec(), out_spec(), out_spec()],
        ),
        compiler_params=pltpu.CompilerParams(
            dimension_semantics=("parallel", "parallel"),
            vmem_limit_bytes=vmem),
    )(x_pad, w_qkv)


# ------------------- Stage 2: flash attention + fused output proj --------------
def _flash_mhsa_kernel(q_ref, k_ref, v_ref, w_out_ref, b_ref, o_ref,
                       m_ref, l_ref, acc_ref, staged_ref,
                       *, heads, dh, tkv, kv_len, mask_kv):
    ki = pl.program_id(2)

    @pl.when(ki == 0)
    def _():
        m_ref[...] = jnp.full_like(m_ref, -jnp.inf)
        l_ref[...] = jnp.zeros_like(l_ref)
        acc_ref[...] = jnp.zeros_like(acc_ref)

    q = q_ref[0]                       # (heads, tq, dh)  bf16 (scale folded into Wq)
    k = k_ref[0]                       # (heads, tkv, dh) bf16
    v = v_ref[0]                       # (heads, tkv, dh) bf16

    # Batched-over-heads score tile; no materialized transpose.
    s = jnp.einsum('hqd,hkd->hqk', q, k,
                   preferred_element_type=jnp.float32)            # (heads, tq, tkv)
    if mask_kv:                        # static flag: only when seq was padded
        col = lax.broadcasted_iota(jnp.int32, s.shape, 2) + ki * tkv
        s = jnp.where(col < kv_len, s, _NEG_INF)

    # Online softmax in f32.
    m_prev = m_ref[...]
    m_new = jnp.maximum(m_prev, jnp.max(s, axis=-1, keepdims=True))
    alpha = jnp.exp(m_prev - m_new)
    p = jnp.exp(s - m_new)
    l_ref[...] = alpha * l_ref[...] + jnp.sum(p, axis=-1, keepdims=True)
    acc_ref[...] = alpha * acc_ref[...] + jnp.einsum(
        'hqk,hkd->hqd', p.astype(jnp.bfloat16), v,
        preferred_element_type=jnp.float32)
    m_ref[...] = m_new

    @pl.when(ki == pl.num_programs(2) - 1)
    def _():
        inv_l = pl.reciprocal(l_ref[...], approx=True)            # EUP slot
        out_h = (acc_ref[...] * inv_l).astype(jnp.bfloat16)       # (heads, tq, dh)
        # Stage per-head results lane-contiguously (static 64-lane slices).
        for h in range(heads):
            staged_ref[:, h * dh:(h + 1) * dh] = out_h[h]
        # Fused cross-head output projection: ONE K=inner MXU matmul + bias.
        proj = jnp.dot(staged_ref[...], w_out_ref[...],
                       preferred_element_type=jnp.float32)        # (tq, dim_pad)
        o_ref[...] = (proj + b_ref[...])[None]


def _flash_attention(q, k, v, w_out_t, bias, *, kv_len, tq, tkv):
    b, heads, n_pad, dh = q.shape
    inner, dim_pad = w_out_t.shape
    kern = functools.partial(_flash_mhsa_kernel, heads=heads, dh=dh, tkv=tkv,
                             kv_len=kv_len, mask_kv=(kv_len != n_pad))
    vmem = _vmem_limit_bytes(
        heads * tq * dh * 2,            # q tile
        2 * heads * tkv * dh * 2,       # k + v tiles
        inner * dim_pad * 2,            # resident W_out
        tq * dim_pad * 4,               # output tile
        heads * tq * dh * 4,            # acc scratch
        tq * inner * 2)                 # staged scratch
    return pl.pallas_call(
        kern,
        out_shape=jax.ShapeDtypeStruct((b, n_pad, dim_pad), jnp.float32),
        grid_spec=pltpu.PrefetchScalarGridSpec(
            num_scalar_prefetch=0,
            grid=(b, n_pad // tq, n_pad // tkv),
            in_specs=[
                pl.BlockSpec((1, heads, tq, dh),
                             lambda bi, qi, ki: (bi, 0, qi, 0)),
                pl.BlockSpec((1, heads, tkv, dh),
                             lambda bi, qi, ki: (bi, 0, ki, 0)),
                pl.BlockSpec((1, heads, tkv, dh),
                             lambda bi, qi, ki: (bi, 0, ki, 0)),
                # resident output-projection weight + bias
                pl.BlockSpec((inner, dim_pad), lambda bi, qi, ki: (0, 0)),
                pl.BlockSpec((1, dim_pad), lambda bi, qi, ki: (0, 0)),
            ],
            out_specs=pl.BlockSpec((1, tq, dim_pad),
                                   lambda bi, qi, ki: (bi, qi, 0)),
            scratch_shapes=[
                pltpu.VMEM((heads, tq, 1), jnp.float32),   # m (online-softmax max)
                pltpu.VMEM((heads, tq, 1), jnp.float32),   # l (online-softmax sum)
                pltpu.VMEM((heads, tq, dh), jnp.float32),  # attn @ v accumulator
                pltpu.VMEM((tq, inner), jnp.bfloat16),     # staged heads for out-proj
            ],
        ),
        compiler_params=pltpu.CompilerParams(
            dimension_semantics=("parallel", "parallel", "arbitrary"),
            vmem_limit_bytes=vmem),
    )(q, k, v, w_out_t, bias)


# ----------------------------- Module wrapper ----------------------------------
class MultiHeadSelfAttentionPallas:
    def __init__(self, dim, heads=8, dim_head=64, key=jax.random.PRNGKey(0)):
        inner_dim = dim_head * heads
        self.dim = dim
        self.heads = heads
        self.dim_head = dim_head
        self.inner_dim = inner_dim
        self.scale = dim_head ** (-0.5)

        k1, k2, k3 = jax.random.split(key, 3)
        # Master params in f32, PyTorch nn.Linear layout:
        #   to_qkv.weight: (3*inner, dim), to_out.weight: (dim, inner), to_out.bias: (dim,)
        self.w_qkv = (jax.random.normal(k1, (inner_dim * 3, dim), jnp.float32)
                      * (1.0 / jnp.sqrt(dim)))
        self.w_out = (jax.random.normal(k2, (dim, inner_dim), jnp.float32)
                      * (1.0 / jnp.sqrt(inner_dim)))
        self.b_out = jax.random.normal(k3, (dim,), jnp.float32) * 0.01

        # ---- kernel-side parameter prep (one-time) ----
        d_pad = _round_up(dim, _LANE)          # lane-dense contraction / output dims
        self.d_pad = d_pad

        w_qkv_t = self.w_qkv.T                                    # (dim, 3*inner)
        wq, wk, wv = jnp.split(w_qkv_t, 3, axis=1)                # (dim, inner) each
        per_head = lambda w: w.reshape(dim, heads, dim_head).transpose(1, 0, 2)
        w_stack = jnp.stack([per_head(wq) * self.scale,           # fold softmax scale
                             per_head(wk), per_head(wv)], axis=0)  # (3, heads, dim, dh)
        w_stack = jnp.pad(w_stack, ((0, 0), (0, 0), (0, d_pad - dim), (0, 0)))
        self.w_qkv_k = w_stack.astype(jnp.bfloat16)               # (3, heads, d_pad, dh)

        self.w_out_k = jnp.pad(self.w_out.T,
                               ((0, 0), (0, d_pad - dim))).astype(jnp.bfloat16)
        self.b_out_k = jnp.pad(self.b_out, (0, d_pad - dim)).reshape(1, d_pad)  # f32

    def __call__(self, x):
        b, n, d = x.shape
        assert d == self.dim
        tq, tkv, n_pad = _choose_tiles(n)
        x_pad = jnp.pad(x, ((0, 0), (0, n_pad - n),
                            (0, self.d_pad - d))).astype(jnp.bfloat16)
        q, k, v = _qkv_projection(x_pad, self.w_qkv_k, heads=self.heads,
                                  dim_head=self.dim_head, tile_n=tq)
        out = _flash_attention(q, k, v, self.w_out_k, self.b_out_k,
                               kv_len=n, tq=tq, tkv=tkv)
        return out[:, :n, :d]


# ----------------------------- Reference (pure JAX, f32) -----------------------
def reference_forward(module, x):
    b, n, d = x.shape
    qkv = x @ module.w_qkv.T                                      # (b, n, 3*inner)
    q, k, v = jnp.split(qkv, 3, axis=-1)
    split_heads = lambda t: t.reshape(b, n, module.heads,
                                      module.dim_head).transpose(0, 2, 1, 3)
    q, k, v = map(split_heads, (q, k, v))
    dots = jnp.einsum('bhid,bhjd->bhij', q, k) * module.scale
    attn = jax.nn.softmax(dots, axis=-1)
    out = jnp.einsum('bhij,bhjd->bhid', attn, v)
    out = out.transpose(0, 2, 1, 3).reshape(b, n, module.inner_dim)
    return out @ module.w_out.T + module.b_out


if __name__ == "__main__":
    key = jax.random.PRNGKey(0)
    kx, kp, kx2 = jax.random.split(key, 3)

    b, n, dim = 2, 8, 32
    heads, dim_head = 8, 64

    mhsa = MultiHeadSelfAttentionPallas(dim, heads=heads, dim_head=dim_head, key=kp)

    x = jax.random.normal(kx, (b, n, dim), jnp.float32)
    y = jax.block_until_ready(mhsa(x))
    y_ref = reference_forward(mhsa, x)
    assert y.shape == (b, n, dim)
    # bf16 matmul operands + approx reciprocal -> bf16-level tolerance vs f32 ref.
    rel = float(jnp.max(jnp.abs(y - y_ref)) / (jnp.max(jnp.abs(y_ref)) + 1e-6))
    assert rel < 3e-2, f"mismatch vs reference: rel_err={rel}"

    # Second small case exercises the seq-padding + kv-mask path (n % 8 != 0).
    x2 = jax.random.normal(kx2, (1, 20, dim), jnp.float32)
    y2 = jax.block_until_ready(mhsa(x2))
    y2_ref = reference_forward(mhsa, x2)
    assert y2.shape == (1, 20, dim)
    rel2 = float(jnp.max(jnp.abs(y2 - y2_ref)) / (jnp.max(jnp.abs(y2_ref)) + 1e-6))
    assert rel2 < 3e-2, f"mismatch vs reference (masked case): rel_err={rel2}"

    print("KERNEL_OK")
</pallas_src>

<mosaic_0001>
module attributes {stable_mosaic.version = 11 : i64} {
  func.func @_qkv_proj_kernel(%arg0: i32, %arg1: i32, %arg2: memref<1x8x128xbf16, #tpu.memory_space<vmem>>, %arg3: memref<3x8x128x64xbf16, #tpu.memory_space<vmem>>, %arg4: memref<1x8x8x64xbf16, #tpu.memory_space<vmem>>, %arg5: memref<1x8x8x64xbf16, #tpu.memory_space<vmem>>, %arg6: memref<1x8x8x64xbf16, #tpu.memory_space<vmem>>) attributes {dimension_semantics = [#tpu.dimension_semantics<parallel>, #tpu.dimension_semantics<parallel>], iteration_bounds = array<i64: 2, 1>, scalar_prefetch = 0 : i64, scratch_operands = 0 : i64, tpu.core_type = #tpu.core_type<tc>, window_params = [{transform_indices = @transform_0, window_bounds = array<i64: 1, 8, 128>}, {pipeline_mode = #tpu.pipeline_mode<synchronous>, transform_indices = @transform_1, window_bounds = array<i64: 3, 8, 128, 64>}, {transform_indices = @transform_2, window_bounds = array<i64: 1, 8, 8, 64>}, {transform_indices = @transform_3, window_bounds = array<i64: 1, 8, 8, 64>}, {transform_indices = @transform_4, window_bounds = array<i64: 1, 8, 8, 64>}]} {
    %c0 = arith.constant 0 : index
    %c0_0 = arith.constant 0 : index
    %c0_1 = arith.constant 0 : index
    %0 = vector.load %arg2[%c0, %c0_0, %c0_1] : memref<1x8x128xbf16, #tpu.memory_space<vmem>>, vector<1x8x128xbf16>
    %1 = vector.shape_cast %0 : vector<1x8x128xbf16> to vector<8x128xbf16>
    %c0_2 = arith.constant 0 : index
    %c0_3 = arith.constant 0 : index
    %c0_4 = arith.constant 0 : index
    %c0_5 = arith.constant 0 : index
    %2 = vector.load %arg3[%c0_2, %c0_3, %c0_4, %c0_5] : memref<3x8x128x64xbf16, #tpu.memory_space<vmem>>, vector<1x1x128x64xbf16>
    %3 = vector.shape_cast %2 : vector<1x1x128x64xbf16> to vector<128x64xbf16>
    %cst = arith.constant dense<0.000000e+00> : vector<8x64xf32>
    %4 = tpu.matmul %1, %3, %cst {dimension_numbers = #tpu.dot_dimension_numbers<[1], [0], [0], [1], [0, 0, 1, 1], [], []>} : vector<8x128xbf16>, vector<128x64xbf16>, vector<8x64xf32> -> vector<8x64xf32>
    %5 = arith.truncf %4 : vector<8x64xf32> to vector<8x64xbf16>
    %c0_6 = arith.constant 0 : index
    %c0_7 = arith.constant 0 : index
    %c0_8 = arith.constant 0 : index
    %c0_9 = arith.constant 0 : index
    %6 = vector.load %arg4[%c0_6, %c0_7, %c0_8, %c0_9] : memref<1x8x8x64xbf16, #tpu.memory_space<vmem>>, vector<1x1x8x64xbf16>
    %7 = vector.shape_cast %6 : vector<1x1x8x64xbf16> to vector<8x64xbf16>
    %8 = vector.shape_cast %5 : vector<8x64xbf16> to vector<1x1x8x64xbf16>
    tpu.vector_store %arg4[%c0_6, %c0_7, %c0_8, %c0_9], %8 {strides = array<i32>} : memref<1x8x8x64xbf16, #tpu.memory_space<vmem>>, vector<1x1x8x64xbf16>,
    %c1 = arith.constant 1 : index
    %c0_10 = arith.constant 0 : index
    %c0_11 = arith.constant 0 : index
    %c0_12 = arith.constant 0 : index
    %9 = vector.load %arg3[%c1, %c0_10, %c0_11, %c0_12] : memref<3x8x128x64xbf16, #tpu.memory_space<vmem>>, vector<1x1x128x64xbf16>
    %10 = vector.shape_cast %9 : vector<1x1x128x64xbf16> to vector<128x64xbf16>
    %cst_13 = arith.constant dense<0.000000e+00> : vector<8x64xf32>
    %11 = tpu.matmul %1, %10, %cst_13 {dimension_numbers = #tpu.dot_dimension_numbers<[1], [0], [0], [1], [0, 0, 1, 1], [], []>} : vector<8x128xbf16>, vector<128x64xbf16>, vector<8x64xf32> -> vector<8x64xf32>
    %12 = arith.truncf %11 : vector<8x64xf32> to vector<8x64xbf16>
    %c0_14 = arith.constant 0 : index
    %c0_15 = arith.constant 0 : index
    %c0_16 = arith.constant 0 : index
    %c0_17 = arith.constant 0 : index
    %13 = vector.load %arg5[%c0_14, %c0_15, %c0_16, %c0_17] : memref<1x8x8x64xbf16, #tpu.memory_space<vmem>>, vector<1x1x8x64xbf16>
    %14 = vector.shape_cast %13 : vector<1x1x8x64xbf16> to vector<8x64xbf16>
    %15 = vector.shape_cast %12 : vector<8x64xbf16> to vector<1x1x8x64xbf16>
    tpu.vector_store %arg5[%c0_14, %c0_15, %c0_16, %c0_17], %15 {strides = array<i32>} : memref<1x8x8x64xbf16, #tpu.memory_space<vmem>>, vector<1x1x8x64xbf16>,
    %c2 = arith.constant 2 : index
    %c0_18 = arith.constant 0 : index
    %c0_19 = arith.constant 0 : index
    %c0_20 = arith.constant 0 : index
    %16 = vector.load %arg3[%c2, %c0_18, %c0_19, %c0_20] : memref<3x8x128x64xbf16, #tpu.memory_space<vmem>>, vector<1x1x128x64xbf16>
    %17 = vector.shape_cast %16 : vector<1x1x128x64xbf16> to vector<128x64xbf16>
    %cst_21 = arith.constant dense<0.000000e+00> : vector<8x64xf32>
    %18 = tpu.matmul %1, %17, %cst_21 {dimension_numbers = #tpu.dot_dimension_numbers<[1], [0], [0], [1], [0, 0, 1, 1], [], []>} : vector<8x128xbf16>, vector<128x64xbf16>, vector<8x64xf32> -> vector<8x64xf32>
    %19 = arith.truncf %18 : vector<8x64xf32> to vector<8x64xbf16>
    %c0_22 = arith.constant 0 : index
    %c0_23 = arith.constant 0 : index
    %c0_24 = arith.constant 0 : index
    %c0_25 = arith.constant 0 : index
    %20 = vector.load %arg6[%c0_22, %c0_23, %c0_24, %c0_25] : memref<1x8x8x64xbf16, #tpu.memory_space<vmem>>, vector<1x1x8x64xbf16>
    %21 = vector.shape_cast %20 : vector<1x1x8x64xbf16> to vector<8x64xbf16>
    %22 = vector.shape_cast %19 : vector<8x64xbf16> to vector<1x1x8x64xbf16>
    tpu.vector_store %arg6[%c0_22, %c0_23, %c0_24, %c0_25], %22 {strides = array<i32>} : memref<1x8x8x64xbf16, #tpu.memory_space<vmem>>, vector<1x1x8x64xbf16>,
    %c0_26 = arith.constant 0 : index
    %c1_27 = arith.constant 1 : index
    %c0_28 = arith.constant 0 : index
    %c0_29 = arith.constant 0 : index
    %23 = vector.load %arg3[%c0_26, %c1_27, %c0_28, %c0_29] : memref<3x8x128x64xbf16, #tpu.memory_space<vmem>>, vector<1x1x128x64xbf16>
    %24 = vector.shape_cast %23 : vector<1x1x128x64xbf16> to vector<128x64xbf16>
    %cst_30 = arith.constant dense<0.000000e+00> : vector<8x64xf32>
    %25 = tpu.matmul %1, %24, %cst_30 {dimension_numbers = #tpu.dot_dimension_numbers<[1], [0], [0], [1], [0, 0, 1, 1], [], []>} : vector<8x128xbf16>, vector<128x64xbf16>, vector<8x64xf32> -> vector<8x64xf32>
    %26 = arith.truncf %25 : vector<8x64xf32> to vector<8x64xbf16>
    %c0_31 = arith.constant 0 : index
    %c1_32 = arith.constant 1 : index
    %c0_33 = arith.constant 0 : index
    %c0_34 = arith.constant 0 : index
    %27 = vector.load %arg4[%c0_31, %c1_32, %c0_33, %c0_34] : memref<1x8x8x64xbf16, #tpu.memory_space<vmem>>, vector<1x1x8x64xbf16>
    %28 = vector.shape_cast %27 : vector<1x1x8x64xbf16> to vector<8x64xbf16>
    %29 = vector.shape_cast %26 : vector<8x64xbf16> to vector<1x1x8x64xbf16>
    tpu.vector_store %arg4[%c0_31, %c1_32, %c0_33, %c0_34], %29 {strides = array<i32>} : memref<1x8x8x64xbf16, #tpu.memory_space<vmem>>, vector<1x1x8x64xbf16>,
    %c1_35 = arith.constant 1 : index
    %c1_36 = arith.constant 1 : index
    %c0_37 = arith.constant 0 : index
    %c0_38 = arith.constant 0 : index
    %30 = vector.load %arg3[%c1_35, %c1_36, %c0_37, %c0_38] : memref<3x8x128x64xbf16, #tpu.memory_space<vmem>>, vector<1x1x128x64xbf16>
    %31 = vector.shape_cast %30 : vector<1x1x128x64xbf16> to vector<128x64xbf16>
    %cst_39 = arith.constant dense<0.000000e+00> : vector<8x64xf32>
    %32 = tpu.matmul %1, %31, %cst_39 {dimension_numbers = #tpu.dot_dimension_numbers<[1], [0], [0], [1], [0, 0, 1, 1], [], []>} : vector<8x128xbf16>, vector<128x64xbf16>, vector<8x64xf32> -> vector<8x64xf32>
    %33 = arith.truncf %32 : vector<8x64xf32> to vector<8x64xbf16>
    %c0_40 = arith.constant 0 : index
    %c1_41 = arith.constant 1 : index
    %c0_42 = arith.constant 0 : index
    %c0_43 = arith.constant 0 : index
    %34 = vector.load %arg5[%c0_40, %c1_41, %c0_42, %c0_43] : memref<1x8x8x64xbf16, #tpu.memory_space<vmem>>, vector<1x1x8x64xbf16>
    %35 = vector.shape_cast %34 : vector<1x1x8x64xbf16> to vector<8x64xbf16>
    %36 = vector.shape_cast %33 : vector<8x64xbf16> to vector<1x1x8x64xbf16>
    tpu.vector_store %arg5[%c0_40, %c1_41, %c0_42, %c0_43], %36 {strides = array<i32>} : memref<1x8x8x64xbf16, #tpu.memory_space<vmem>>, vector<1x1x8x64xbf16>,
    %c2_44 = arith.constant 2 : index
    %c1_45 = arith.constant 1 : index
    %c0_46 = arith.constant 0 : index
    %c0_47 = arith.constant 0 : index
    %37 = vector.load %arg3[%c2_44, %c1_45, %c0_46, %c0_47] : memref<3x8x128x64xbf16, #tpu.memory_space<vmem>>, vector<1x1x128x64xbf16>
    %38 = vector.shape_cast %37 : vector<1x1x128x64xbf16> to vector<128x64xbf16>
    %cst_48 = arith.constant dense<0.000000e+00> : vector<8x64xf32>
    %39 = tpu.matmul %1, %38, %cst_48 {dimension_numbers = #tpu.dot_dimension_numbers<[1], [0], [0], [1], [0, 0, 1, 1], [], []>} : vector<8x128xbf16>, vector<128x64xbf16>, vector<8x64xf32> -> vector<8x64xf32>
    %40 = arith.truncf %39 : vector<8x64xf32> to vector<8x64xbf16>
    %c0_49 = arith.constant 0 : index
    %c1_50 = arith.constant 1 : index
    %c0_51 = arith.constant 0 : index
    %c0_52 = arith.constant 0 : index
    %41 = vector.load %arg6[%c0_49, %c1_50, %c0_51, %c0_52] : memref<1x8x8x64xbf16, #tpu.memory_space<vmem>>, vector<1x1x8x64xbf16>
    %42 = vector.shape_cast %41 : vector<1x1x8x64xbf16> to vector<8x64xbf16>
    %43 = vector.shape_cast %40 : vector<8x64xbf16> to vector<1x1x8x64xbf16>
    tpu.vector_store %arg6[%c0_49, %c1_50, %c0_51, %c0_52], %43 {strides = array<i32>} : memref<1x8x8x64xbf16, #tpu.memory_space<vmem>>, vector<1x1x8x64xbf16>,
    %c0_53 = arith.constant 0 : index
    %c2_54 = arith.constant 2 : index
    %c0_55 = arith.constant 0 : index
    %c0_56 = arith.constant 0 : index
    %44 = vector.load %arg3[%c0_53, %c2_54, %c0_55, %c0_56] : memref<3x8x128x64xbf16, #tpu.memory_space<vmem>>, vector<1x1x128x64xbf16>
    %45 = vector.shape_cast %44 : vector<1x1x128x64xbf16> to vector<128x64xbf16>
    %cst_57 = arith.constant dense<0.000000e+00> : vector<8x64xf32>
    %46 = tpu.matmul %1, %45, %cst_57 {dimension_numbers = #tpu.dot_dimension_numbers<[1], [0], [0], [1], [0, 0, 1, 1], [], []>} : vector<8x128xbf16>, vector<128x64xbf16>, vector<8x64xf32> -> vector<8x64xf32>
    %47 = arith.truncf %46 : vector<8x64xf32> to vector<8x64xbf16>
    %c0_58 = arith.constant 0 : index
    %c2_59 = arith.constant 2 : index
    %c0_60 = arith.constant 0 : index
    %c0_61 = arith.constant 0 : index
    %48 = vector.load %arg4[%c0_58, %c2_59, %c0_60, %c0_61] : memref<1x8x8x64xbf16, #tpu.memory_space<vmem>>, vector<1x1x8x64xbf16>
    %49 = vector.shape_cast %48 : vector<1x1x8x64xbf16> to vector<8x64xbf16>
    %50 = vector.shape_cast %47 : vector<8x64xbf16> to vector<1x1x8x64xbf16>
    tpu.vector_store %arg4[%c0_58, %c2_59, %c0_60, %c0_61], %50 {strides = array<i32>} : memref<1x8x8x64xbf16, #tpu.memory_space<vmem>>, vector<1x1x8x64xbf16>,
    %c1_62 = arith.constant 1 : index
    %c2_63 = arith.constant 2 : index
    %c0_64 = arith.constant 0 : index
    %c0_65 = arith.constant 0 : index
    %51 = vector.load %arg3[%c1_62, %c2_63, %c0_64, %c0_65] : memref<3x8x128x64xbf16, #tpu.memory_space<vmem>>, vector<1x1x128x64xbf16>
    %52 = vector.shape_cast %51 : vector<1x1x128x64xbf16> to vector<128x64xbf16>
    %cst_66 = arith.constant dense<0.000000e+00> : vector<8x64xf32>
    %53 = tpu.matmul %1, %52, %cst_66 {dimension_numbers = #tpu.dot_dimension_numbers<[1], [0], [0], [1], [0, 0, 1, 1], [], []>} : vector<8x128xbf16>, vector<128x64xbf16>, vector<8x64xf32> -> vector<8x64xf32>
    %54 = arith.truncf %53 : vector<8x64xf32> to vector<8x64xbf16>
    %c0_67 = arith.constant 0 : index
    %c2_68 = arith.constant 2 : index
    %c0_69 = arith.constant 0 : index
    %c0_70 = arith.constant 0 : index
    %55 = vector.load %arg5[%c0_67, %c2_68, %c0_69, %c0_70] : memref<1x8x8x64xbf16, #tpu.memory_space<vmem>>, vector<1x1x8x64xbf16>
    %56 = vector.shape_cast %55 : vector<1x1x8x64xbf16> to vector<8x64xbf16>
    %57 = vector.shape_cast %54 : vector<8x64xbf16> to vector<1x1x8x64xbf16>
    tpu.vector_store %arg5[%c0_67, %c2_68, %c0_69, %c0_70], %57 {strides = array<i32>} : memref<1x8x8x64xbf16, #tpu.memory_space<vmem>>, vector<1x1x8x64xbf16>,
    %c2_71 = arith.constant 2 : index
    %c2_72 = arith.constant 2 : index
    %c0_73 = arith.constant 0 : index
    %c0_74 = arith.constant 0 : index
    %58 = vector.load %arg3[%c2_71, %c2_72, %c0_73, %c0_74] : memref<3x8x128x64xbf16, #tpu.memory_space<vmem>>, vector<1x1x128x64xbf16>
    %59 = vector.shape_cast %58 : vector<1x1x128x64xbf16> to vector<128x64xbf16>
    %cst_75 = arith.constant dense<0.000000e+00> : vector<8x64xf32>
    %60 = tpu.matmul %1, %59, %cst_75 {dimension_numbers = #tpu.dot_dimension_numbers<[1], [0], [0], [1], [0, 0, 1, 1], [], []>} : vector<8x128xbf16>, vector<128x64xbf16>, vector<8x64xf32> -> vector<8x64xf32>
    %61 = arith.truncf %60 : vector<8x64xf32> to vector<8x64xbf16>
    %c0_76 = arith.constant 0 : index
    %c2_77 = arith.constant 2 : index
    %c0_78 = arith.constant 0 : index
    %c0_79 = arith.constant 0 : index
    %62 = vector.load %arg6[%c0_76, %c2_77, %c0_78, %c0_79] : memref<1x8x8x64xbf16, #tpu.memory_space<vmem>>, vector<1x1x8x64xbf16>
    %63 = vector.shape_cast %62 : vector<1x1x8x64xbf16> to vector<8x64xbf16>
    %64 = vector.shape_cast %61 : vector<8x64xbf16> to vector<1x1x8x64xbf16>
    tpu.vector_store %arg6[%c0_76, %c2_77, %c0_78, %c0_79], %64 {strides = array<i32>} : memref<1x8x8x64xbf16, #tpu.memory_space<vmem>>, vector<1x1x8x64xbf16>,
    %c0_80 = arith.constant 0 : index
    %c3 = arith.constant 3 : index
    %c0_81 = arith.constant 0 : index
    %c0_82 = arith.constant 0 : index
    %65 = vector.load %arg3[%c0_80, %c3, %c0_81, %c0_82] : memref<3x8x128x64xbf16, #tpu.memory_space<vmem>>, vector<1x1x128x64xbf16>
    %66 = vector.shape_cast %65 : vector<1x1x128x64xbf16> to vector<128x64xbf16>
    %cst_83 = arith.constant dense<0.000000e+00> : vector<8x64xf32>
    %67 = tpu.matmul %1, %66, %cst_83 {dimension_numbers = #tpu.dot_dimension_numbers<[1], [0], [0], [1], [0, 0, 1, 1], [], []>} : vector<8x128xbf16>, vector<128x64xbf16>, vector<8x64xf32> -> vector<8x64xf32>
    %68 = arith.truncf %67 : vector<8x64xf32> to vector<8x64xbf16>
    %c0_84 = arith.constant 0 : index
    %c3_85 = arith.constant 3 : index
    %c0_86 = arith.constant 0 : index
    %c0_87 = arith.constant 0 : index
    %69 = vector.load %arg4[%c0_84, %c3_85, %c0_86, %c0_87] : memref<1x8x8x64xbf16, #tpu.memory_space<vmem>>, vector<1x1x8x64xbf16>
    %70 = vector.shape_cast %69 : vector<1x1x8x64xbf16> to vector<8x64xbf16>
    %71 = vector.shape_cast %68 : vector<8x64xbf16> to vector<1x1x8x64xbf16>
    tpu.vector_store %arg4[%c0_84, %c3_85, %c0_86, %c0_87], %71 {strides = array<i32>} : memref<1x8x8x64xbf16, #tpu.memory_space<vmem>>, vector<1x1x8x64xbf16>,
    %c1_88 = arith.constant 1 : index
    %c3_89 = arith.constant 3 : index
    %c0_90 = arith.constant 0 : index
    %c0_91 = arith.constant 0 : index
    %72 = vector.load %arg3[%c1_88, %c3_89, %c0_90, %c0_91] : memref<3x8x128x64xbf16, #tpu.memory_space<vmem>>, vector<1x1x128x64xbf16>
    %73 = vector.shape_cast %72 : vector<1x1x128x64xbf16> to vector<128x64xbf16>
    %cst_92 = arith.constant dense<0.000000e+00> : vector<8x64xf32>
    %74 = tpu.matmul %1, %73, %cst_92 {dimension_numbers = #tpu.dot_dimension_numbers<[1], [0], [0], [1], [0, 0, 1, 1], [], []>} : vector<8x128xbf16>, vector<128x64xbf16>, vector<8x64xf32> -> vector<8x64xf32>
    %75 = arith.truncf %74 : vector<8x64xf32> to vector<8x64xbf16>
    %c0_93 = arith.constant 0 : index
    %c3_94 = arith.constant 3 : index
    %c0_95 = arith.constant 0 : index
    %c0_96 = arith.constant 0 : index
    %76 = vector.load %arg5[%c0_93, %c3_94, %c0_95, %c0_96] : memref<1x8x8x64xbf16, #tpu.memory_space<vmem>>, vector<1x1x8x64xbf16>
    %77 = vector.shape_cast %76 : vector<1x1x8x64xbf16> to vector<8x64xbf16>
    %78 = vector.shape_cast %75 : vector<8x64xbf16> to vector<1x1x8x64xbf16>
    tpu.vector_store %arg5[%c0_93, %c3_94, %c0_95, %c0_96], %78 {strides = array<i32>} : memref<1x8x8x64xbf16, #tpu.memory_space<vmem>>, vector<1x1x8x64xbf16>,
    %c2_97 = arith.constant 2 : index
    %c3_98 = arith.constant 3 : index
    %c0_99 = arith.constant 0 : index
    %c0_100 = arith.constant 0 : index
    %79 = vector.load %arg3[%c2_97, %c3_98, %c0_99, %c0_100] : memref<3x8x128x64xbf16, #tpu.memory_space<vmem>>, vector<1x1x128x64xbf16>
    %80 = vector.shape_cast %79 : vector<1x1x128x64xbf16> to vector<128x64xbf16>
    %cst_101 = arith.constant dense<0.000000e+00> : vector<8x64xf32>
    %81 = tpu.matmul %1, %80, %cst_101 {dimension_numbers = #tpu.dot_dimension_numbers<[1], [0], [0], [1], [0, 0, 1, 1], [], []>} : vector<8x128xbf16>, vector<128x64xbf16>, vector<8x64xf32> -> vector<8x64xf32>
    %82 = arith.truncf %81 : vector<8x64xf32> to vector<8x64xbf16>
    %c0_102 = arith.constant 0 : index
    %c3_103 = arith.constant 3 : index
    %c0_104 = arith.constant 0 : index
    %c0_105 = arith.constant 0 : index
    %83 = vector.load %arg6[%c0_102, %c3_103, %c0_104, %c0_105] : memref<1x8x8x64xbf16, #tpu.memory_space<vmem>>, vector<1x1x8x64xbf16>
    %84 = vector.shape_cast %83 : vector<1x1x8x64xbf16> to vector<8x64xbf16>
    %85 = vector.shape_cast %82 : vector<8x64xbf16> to vector<1x1x8x64xbf16>
    tpu.vector_store %arg6[%c0_102, %c3_103, %c0_104, %c0_105], %85 {strides = array<i32>} : memref<1x8x8x64xbf16, #tpu.memory_space<vmem>>, vector<1x1x8x64xbf16>,
    %c0_106 = arith.constant 0 : index
    %c4 = arith.constant 4 : index
    %c0_107 = arith.constant 0 : index
    %c0_108 = arith.constant 0 : index
    %86 = vector.load %arg3[%c0_106, %c4, %c0_107, %c0_108] : memref<3x8x128x64xbf16, #tpu.memory_space<vmem>>, vector<1x1x128x64xbf16>
    %87 = vector.shape_cast %86 : vector<1x1x128x64xbf16> to vector<128x64xbf16>
    %cst_109 = arith.constant dense<0.000000e+00> : vector<8x64xf32>
    %88 = tpu.matmul %1, %87, %cst_109 {dimension_numbers = #tpu.dot_dimension_numbers<[1], [0], [0], [1], [0, 0, 1, 1], [], []>} : vector<8x128xbf16>, vector<128x64xbf16>, vector<8x64xf32> -> vector<8x64xf32>
    %89 = arith.truncf %88 : vector<8x64xf32> to vector<8x64xbf16>
    %c0_110 = arith.constant 0 : index
    %c4_111 = arith.constant 4 : index
    %c0_112 = arith.constant 0 : index
    %c0_113 = arith.constant 0 : index
    %90 = vector.load %arg4[%c0_110, %c4_111, %c0_112, %c0_113] : memref<1x8x8x64xbf16, #tpu.memory_space<vmem>>, vector<1x1x8x64xbf16>
    %91 = vector.shape_cast %90 : vector<1x1x8x64xbf16> to vector<8x64xbf16>
    %92 = vector.shape_cast %89 : vector<8x64xbf16> to vector<1x1x8x64xbf16>
    tpu.vector_store %arg4[%c0_110, %c4_111, %c0_112, %c0_113], %92 {strides = array<i32>} : memref<1x8x8x64xbf16, #tpu.memory_space<vmem>>, vector<1x1x8x64xbf16>,
    %c1_114 = arith.constant 1 : index
    %c4_115 = arith.constant 4 : index
    %c0_116 = arith.constant 0 : index
    %c0_117 = arith.constant 0 : index
    %93 = vector.load %arg3[%c1_114, %c4_115, %c0_116, %c0_117] : memref<3x8x128x64xbf16, #tpu.memory_space<vmem>>, vector<1x1x128x64xbf16>
    %94 = vector.shape_cast %93 : vector<1x1x128x64xbf16> to vector<128x64xbf16>
    %cst_118 = arith.constant dense<0.000000e+00> : vector<8x64xf32>
    %95 = tpu.matmul %1, %94, %cst_118 {dimension_numbers = #tpu.dot_dimension_numbers<[1], [0], [0], [1], [0, 0, 1, 1], [], []>} : vector<8x128xbf16>, vector<128x64xbf16>, vector<8x64xf32> -> vector<8x64xf32>
    %96 = arith.truncf %95 : vector<8x64xf32> to vector<8x64xbf16>
    %c0_119 = arith.constant 0 : index
    %c4_120 = arith.constant 4 : index
    %c0_121 = arith.constant 0 : index
    %c0_122 = arith.constant 0 : index
    %97 = vector.load %arg5[%c0_119, %c4_120, %c0_121, %c0_122] : memref<1x8x8x64xbf16, #tpu.memory_space<vmem>>, vector<1x1x8x64xbf16>
    %98 = vector.shape_cast %97 : vector<1x1x8x64xbf16> to vector<8x64xbf16>
    %99 = vector.shape_cast %96 : vector<8x64xbf16> to vector<1x1x8x64xbf16>
    tpu.vector_store %arg5[%c0_119, %c4_120, %c0_121, %c0_122], %99 {strides = array<i32>} : memref<1x8x8x64xbf16, #tpu.memory_space<vmem>>, vector<1x1x8x64xbf16>,
    %c2_123 = arith.constant 2 : index
    %c4_124 = arith.constant 4 : index
    %c0_125 = arith.constant 0 : index
    %c0_126 = arith.constant 0 : index
    %100 = vector.load %arg3[%c2_123, %c4_124, %c0_125, %c0_126] : memref<3x8x128x64xbf16, #tpu.memory_space<vmem>>, vector<1x1x128x64xbf16>
    %101 = vector.shape_cast %100 : vector<1x1x128x64xbf16> to vector<128x64xbf16>
    %cst_127 = arith.constant dense<0.000000e+00> : vector<8x64xf32>
    %102 = tpu.matmul %1, %101, %cst_127 {dimension_numbers = #tpu.dot_dimension_numbers<[1], [0], [0], [1], [0, 0, 1, 1], [], []>} : vector<8x128xbf16>, vector<128x64xbf16>, vector<8x64xf32> -> vector<8x64xf32>
    %103 = arith.truncf %102 : vector<8x64xf32> to vector<8x64xbf16>
    %c0_128 = arith.constant 0 : index
    %c4_129 = arith.constant 4 : index
    %c0_130 = arith.constant 0 : index
    %c0_131 = arith.constant 0 : index
    %104 = vector.load %arg6[%c0_128, %c4_129, %c0_130, %c0_131] : memref<1x8x8x64xbf16, #tpu.memory_space<vmem>>, vector<1x1x8x64xbf16>
    %105 = vector.shape_cast %104 : vector<1x1x8x64xbf16> to vector<8x64xbf16>
    %106 = vector.shape_cast %103 : vector<8x64xbf16> to vector<1x1x8x64xbf16>
    tpu.vector_store %arg6[%c0_128, %c4_129, %c0_130, %c0_131], %106 {strides = array<i32>} : memref<1x8x8x64xbf16, #tpu.memory_space<vmem>>, vector<1x1x8x64xbf16>,
    %c0_132 = arith.constant 0 : index
    %c5 = arith.constant 5 : index
    %c0_133 = arith.constant 0 : index
    %c0_134 = arith.constant 0 : index
    %107 = vector.load %arg3[%c0_132, %c5, %c0_133, %c0_134] : memref<3x8x128x64xbf16, #tpu.memory_space<vmem>>, vector<1x1x128x64xbf16>
    %108 = vector.shape_cast %107 : vector<1x1x128x64xbf16> to vector<128x64xbf16>
    %cst_135 = arith.constant dense<0.000000e+00> : vector<8x64xf32>
    %109 = tpu.matmul %1, %108, %cst_135 {dimension_numbers = #tpu.dot_dimension_numbers<[1], [0], [0], [1], [0, 0, 1, 1], [], []>} : vector<8x128xbf16>, vector<128x64xbf16>, vector<8x64xf32> -> vector<8x64xf32>
    %110 = arith.truncf %109 : vector<8x64xf32> to vector<8x64xbf16>
    %c0_136 = arith.constant 0 : index
    %c5_137 = arith.constant 5 : index
    %c0_138 = arith.constant 0 : index
    %c0_139 = arith.constant 0 : index
    %111 = vector.load %arg4[%c0_136, %c5_137, %c0_138, %c0_139] : memref<1x8x8x64xbf16, #tpu.memory_space<vmem>>, vector<1x1x8x64xbf16>
    %112 = vector.shape_cast %111 : vector<1x1x8x64xbf16> to vector<8x64xbf16>
    %113 = vector.shape_cast %110 : vector<8x64xbf16> to vector<1x1x8x64xbf16>
    tpu.vector_store %arg4[%c0_136, %c5_137, %c0_138, %c0_139], %113 {strides = array<i32>} : memref<1x8x8x64xbf16, #tpu.memory_space<vmem>>, vector<1x1x8x64xbf16>,
    %c1_140 = arith.constant 1 : index
    %c5_141 = arith.constant 5 : index
    %c0_142 = arith.constant 0 : index
    %c0_143 = arith.constant 0 : index
    %114 = vector.load %arg3[%c1_140, %c5_141, %c0_142, %c0_143] : memref<3x8x128x64xbf16, #tpu.memory_space<vmem>>, vector<1x1x128x64xbf16>
    %115 = vector.shape_cast %114 : vector<1x1x128x64xbf16> to vector<128x64xbf16>
    %cst_144 = arith.constant dense<0.000000e+00> : vector<8x64xf32>
    %116 = tpu.matmul %1, %115, %cst_144 {dimension_numbers = #tpu.dot_dimension_numbers<[1], [0], [0], [1], [0, 0, 1, 1], [], []>} : vector<8x128xbf16>, vector<128x64xbf16>, vector<8x64xf32> -> vector<8x64xf32>
    %117 = arith.truncf %116 : vector<8x64xf32> to vector<8x64xbf16>
    %c0_145 = arith.constant 0 : index
    %c5_146 = arith.constant 5 : index
    %c0_147 = arith.constant 0 : index
    %c0_148 = arith.constant 0 : index
    %118 = vector.load %arg5[%c0_145, %c5_146, %c0_147, %c0_148] : memref<1x8x8x64xbf16, #tpu.memory_space<vmem>>, vector<1x1x8x64xbf16>
    %119 = vector.shape_cast %118 : vector<1x1x8x64xbf16> to vector<8x64xbf16>
    %120 = vector.shape_cast %117 : vector<8x64xbf16> to vector<1x1x8x64xbf16>
    tpu.vector_store %arg5[%c0_145, %c5_146, %c0_147, %c0_148], %120 {strides = array<i32>} : memref<1x8x8x64xbf16, #tpu.memory_space<vmem>>, vector<1x1x8x64xbf16>,
    %c2_149 = arith.constant 2 : index
    %c5_150 = arith.constant 5 : index
    %c0_151 = arith.constant 0 : index
    %c0_152 = arith.constant 0 : index
    %121 = vector.load %arg3[%c2_149, %c5_150, %c0_151, %c0_152] : memref<3x8x128x64xbf16, #tpu.memory_space<vmem>>, vector<1x1x128x64xbf16>
    %122 = vector.shape_cast %121 : vector<1x1x128x64xbf16> to vector<128x64xbf16>
    %cst_153 = arith.constant dense<0.000000e+00> : vector<8x64xf32>
    %123 = tpu.matmul %1, %122, %cst_153 {dimension_numbers = #tpu.dot_dimension_numbers<[1], [0], [0], [1], [0, 0, 1, 1], [], []>} : vector<8x128xbf16>, vector<128x64xbf16>, vector<8x64xf32> -> vector<8x64xf32>
    %124 = arith.truncf %123 : vector<8x64xf32> to vector<8x64xbf16>
    %c0_154 = arith.constant 0 : index
    %c5_155 = arith.constant 5 : index
    %c0_156 = arith.constant 0 : index
    %c0_157 = arith.constant 0 : index
    %125 = vector.load %arg6[%c0_154, %c5_155, %c0_156, %c0_157] : memref<1x8x8x64xbf16, #tpu.memory_space<vmem>>, vector<1x1x8x64xbf16>
    %126 = vector.shape_cast %125 : vector<1x1x8x64xbf16> to vector<8x64xbf16>
    %127 = vector.shape_cast %124 : vector<8x64xbf16> to vector<1x1x8x64xbf16>
    tpu.vector_store %arg6[%c0_154, %c5_155, %c0_156, %c0_157], %127 {strides = array<i32>} : memref<1x8x8x64xbf16, #tpu.memory_space<vmem>>, vector<1x1x8x64xbf16>,
    %c0_158 = arith.constant 0 : index
    %c6 = arith.constant 6 : index
    %c0_159 = arith.constant 0 : index
    %c0_160 = arith.constant 0 : index
    %128 = vector.load %arg3[%c0_158, %c6, %c0_159, %c0_160] : memref<3x8x128x64xbf16, #tpu.memory_space<vmem>>, vector<1x1x128x64xbf16>
    %129 = vector.shape_cast %128 : vector<1x1x128x64xbf16> to vector<128x64xbf16>
    %cst_161 = arith.constant dense<0.000000e+00> : vector<8x64xf32>
    %130 = tpu.matmul %1, %129, %cst_161 {dimension_numbers = #tpu.dot_dimension_numbers<[1], [0], [0], [1], [0, 0, 1, 1], [], []>} : vector<8x128xbf16>, vector<128x64xbf16>, vector<8x64xf32> -> vector<8x64xf32>
    %131 = arith.truncf %130 : vector<8x64xf32> to vector<8x64xbf16>
    %c0_162 = arith.constant 0 : index
    %c6_163 = arith.constant 6 : index
    %c0_164 = arith.constant 0 : index
    %c0_165 = arith.constant 0 : index
    %132 = vector.load %arg4[%c0_162, %c6_163, %c0_164, %c0_165] : memref<1x8x8x64xbf16, #tpu.memory_space<vmem>>, vector<1x1x8x64xbf16>
    %133 = vector.shape_cast %132 : vector<1x1x8x64xbf16> to vector<8x64xbf16>
    %134 = vector.shape_cast %131 : vector<8x64xbf16> to vector<1x1x8x64xbf16>
    tpu.vector_store %arg4[%c0_162, %c6_163, %c0_164, %c0_165], %134 {strides = array<i32>} : memref<1x8x8x64xbf16, #tpu.memory_space<vmem>>, vector<1x1x8x64xbf16>,
    %c1_166 = arith.constant 1 : index
    %c6_167 = arith.constant 6 : index
    %c0_168 = arith.constant 0 : index
    %c0_169 = arith.constant 0 : index
    %135 = vector.load %arg3[%c1_166, %c6_167, %c0_168, %c0_169] : memref<3x8x128x64xbf16, #tpu.memory_space<vmem>>, vector<1x1x128x64xbf16>
    %136 = vector.shape_cast %135 : vector<1x1x128x64xbf16> to vector<128x64xbf16>
    %cst_170 = arith.constant dense<0.000000e+00> : vector<8x64xf32>
    %137 = tpu.matmul %1, %136, %cst_170 {dimension_numbers = #tpu.dot_dimension_numbers<[1], [0], [0], [1], [0, 0, 1, 1], [], []>} : vector<8x128xbf16>, vector<128x64xbf16>, vector<8x64xf32> -> vector<8x64xf32>
    %138 = arith.truncf %137 : vector<8x64xf32> to vector<8x64xbf16>
    %c0_171 = arith.constant 0 : index
    %c6_172 = arith.constant 6 : index
    %c0_173 = arith.constant 0 : index
    %c0_174 = arith.constant 0 : index
    %139 = vector.load %arg5[%c0_171, %c6_172, %c0_173, %c0_174] : memref<1x8x8x64xbf16, #tpu.memory_space<vmem>>, vector<1x1x8x64xbf16>
    %140 = vector.shape_cast %139 : vector<1x1x8x64xbf16> to vector<8x64xbf16>
    %141 = vector.shape_cast %138 : vector<8x64xbf16> to vector<1x1x8x64xbf16>
    tpu.vector_store %arg5[%c0_171, %c6_172, %c0_173, %c0_174], %141 {strides = array<i32>} : memref<1x8x8x64xbf16, #tpu.memory_space<vmem>>, vector<1x1x8x64xbf16>,
    %c2_175 = arith.constant 2 : index
    %c6_176 = arith.constant 6 : index
    %c0_177 = arith.constant 0 : index
    %c0_178 = arith.constant 0 : index
    %142 = vector.load %arg3[%c2_175, %c6_176, %c0_177, %c0_178] : memref<3x8x128x64xbf16, #tpu.memory_space<vmem>>, vector<1x1x128x64xbf16>
    %143 = vector.shape_cast %142 : vector<1x1x128x64xbf16> to vector<128x64xbf16>
    %cst_179 = arith.constant dense<0.000000e+00> : vector<8x64xf32>
    %144 = tpu.matmul %1, %143, %cst_179 {dimension_numbers = #tpu.dot_dimension_numbers<[1], [0], [0], [1], [0, 0, 1, 1], [], []>} : vector<8x128xbf16>, vector<128x64xbf16>, vector<8x64xf32> -> vector<8x64xf32>
    %145 = arith.truncf %144 : vector<8x64xf32> to vector<8x64xbf16>
    %c0_180 = arith.constant 0 : index
    %c6_181 = arith.constant 6 : index
    %c0_182 = arith.constant 0 : index
    %c0_183 = arith.constant 0 : index
    %146 = vector.load %arg6[%c0_180, %c6_181, %c0_182, %c0_183] : memref<1x8x8x64xbf16, #tpu.memory_space<vmem>>, vector<1x1x8x64xbf16>
    %147 = vector.shape_cast %146 : vector<1x1x8x64xbf16> to vector<8x64xbf16>
    %148 = vector.shape_cast %145 : vector<8x64xbf16> to vector<1x1x8x64xbf16>
    tpu.vector_store %arg6[%c0_180, %c6_181, %c0_182, %c0_183], %148 {strides = array<i32>} : memref<1x8x8x64xbf16, #tpu.memory_space<vmem>>, vector<1x1x8x64xbf16>,
    %c0_184 = arith.constant 0 : index
    %c7 = arith.constant 7 : index
    %c0_185 = arith.constant 0 : index
    %c0_186 = arith.constant 0 : index
    %149 = vector.load %arg3[%c0_184, %c7, %c0_185, %c0_186] : memref<3x8x128x64xbf16, #tpu.memory_space<vmem>>, vector<1x1x128x64xbf16>
    %150 = vector.shape_cast %149 : vector<1x1x128x64xbf16> to vector<128x64xbf16>
    %cst_187 = arith.constant dense<0.000000e+00> : vector<8x64xf32>
    %151 = tpu.matmul %1, %150, %cst_187 {dimension_numbers = #tpu.dot_dimension_numbers<[1], [0], [0], [1], [0, 0, 1, 1], [], []>} : vector<8x128xbf16>, vector<128x64xbf16>, vector<8x64xf32> -> vector<8x64xf32>
    %152 = arith.truncf %151 : vector<8x64xf32> to vector<8x64xbf16>
    %c0_188 = arith.constant 0 : index
    %c7_189 = arith.constant 7 : index
    %c0_190 = arith.constant 0 : index
    %c0_191 = arith.constant 0 : index
    %153 = vector.load %arg4[%c0_188, %c7_189, %c0_190, %c0_191] : memref<1x8x8x64xbf16, #tpu.memory_space<vmem>>, vector<1x1x8x64xbf16>
    %154 = vector.shape_cast %153 : vector<1x1x8x64xbf16> to vector<8x64xbf16>
    %155 = vector.shape_cast %152 : vector<8x64xbf16> to vector<1x1x8x64xbf16>
    tpu.vector_store %arg4[%c0_188, %c7_189, %c0_190, %c0_191], %155 {strides = array<i32>} : memref<1x8x8x64xbf16, #tpu.memory_space<vmem>>, vector<1x1x8x64xbf16>,
    %c1_192 = arith.constant 1 : index
    %c7_193 = arith.constant 7 : index
    %c0_194 = arith.constant 0 : index
    %c0_195 = arith.constant 0 : index
    %156 = vector.load %arg3[%c1_192, %c7_193, %c0_194, %c0_195] : memref<3x8x128x64xbf16, #tpu.memory_space<vmem>>, vector<1x1x128x64xbf16>
    %157 = vector.shape_cast %156 : vector<1x1x128x64xbf16> to vector<128x64xbf16>
    %cst_196 = arith.constant dense<0.000000e+00> : vector<8x64xf32>
    %158 = tpu.matmul %1, %157, %cst_196 {dimension_numbers = #tpu.dot_dimension_numbers<[1], [0], [0], [1], [0, 0, 1, 1], [], []>} : vector<8x128xbf16>, vector<128x64xbf16>, vector<8x64xf32> -> vector<8x64xf32>
    %159 = arith.truncf %158 : vector<8x64xf32> to vector<8x64xbf16>
    %c0_197 = arith.constant 0 : index
    %c7_198 = arith.constant 7 : index
    %c0_199 = arith.constant 0 : index
    %c0_200 = arith.constant 0 : index
    %160 = vector.load %arg5[%c0_197, %c7_198, %c0_199, %c0_200] : memref<1x8x8x64xbf16, #tpu.memory_space<vmem>>, vector<1x1x8x64xbf16>
    %161 = vector.shape_cast %160 : vector<1x1x8x64xbf16> to vector<8x64xbf16>
    %162 = vector.shape_cast %159 : vector<8x64xbf16> to vector<1x1x8x64xbf16>
    tpu.vector_store %arg5[%c0_197, %c7_198, %c0_199, %c0_200], %162 {strides = array<i32>} : memref<1x8x8x64xbf16, #tpu.memory_space<vmem>>, vector<1x1x8x64xbf16>,
    %c2_201 = arith.constant 2 : index
    %c7_202 = arith.constant 7 : index
    %c0_203 = arith.constant 0 : index
    %c0_204 = arith.constant 0 : index
    %163 = vector.load %arg3[%c2_201, %c7_202, %c0_203, %c0_204] : memref<3x8x128x64xbf16, #tpu.memory_space<vmem>>, vector<1x1x128x64xbf16>
    %164 = vector.shape_cast %163 : vector<1x1x128x64xbf16> to vector<128x64xbf16>
    %cst_205 = arith.constant dense<0.000000e+00> : vector<8x64xf32>
    %165 = tpu.matmul %1, %164, %cst_205 {dimension_numbers = #tpu.dot_dimension_numbers<[1], [0], [0], [1], [0, 0, 1, 1], [], []>} : vector<8x128xbf16>, vector<128x64xbf16>, vector<8x64xf32> -> vector<8x64xf32>
    %166 = arith.truncf %165 : vector<8x64xf32> to vector<8x64xbf16>
    %c0_206 = arith.constant 0 : index
    %c7_207 = arith.constant 7 : index
    %c0_208 = arith.constant 0 : index
    %c0_209 = arith.constant 0 : index
    %167 = vector.load %arg6[%c0_206, %c7_207, %c0_208, %c0_209] : memref<1x8x8x64xbf16, #tpu.memory_space<vmem>>, vector<1x1x8x64xbf16>
    %168 = vector.shape_cast %167 : vector<1x1x8x64xbf16> to vector<8x64xbf16>
    %169 = vector.shape_cast %166 : vector<8x64xbf16> to vector<1x1x8x64xbf16>
    tpu.vector_store %arg6[%c0_206, %c7_207, %c0_208, %c0_209], %169 {strides = array<i32>} : memref<1x8x8x64xbf16, #tpu.memory_space<vmem>>, vector<1x1x8x64xbf16>,
    return
  }
  func.func @transform_0(%arg0: i32, %arg1: i32) -> (i32, i32, i32) {
    %c0_i32 = arith.constant 0 : i32
    %c0_i32_0 = arith.constant 0 : i32
    return %arg0, %arg1, %c0_i32 : i32, i32, i32
  }
  func.func @transform_1(%arg0: i32, %arg1: i32) -> (i32, i32, i32, i32) {
    %c0_i32 = arith.constant 0 : i32
    %c0_i32_0 = arith.constant 0 : i32
    %c0_i32_1 = arith.constant 0 : i32
    %c0_i32_2 = arith.constant 0 : i32
    %c0_i32_3 = arith.constant 0 : i32
    return %c0_i32, %c0_i32_0, %c0_i32_1, %c0_i32_2 : i32, i32, i32, i32
  }
  func.func @transform_2(%arg0: i32, %arg1: i32) -> (i32, i32, i32, i32) {
    %c0_i32 = arith.constant 0 : i32
    %c0_i32_0 = arith.constant 0 : i32
    %c0_i32_1 = arith.constant 0 : i32
    return %arg0, %c0_i32, %arg1, %c0_i32_0 : i32, i32, i32, i32
  }
  func.func @transform_3(%arg0: i32, %arg1: i32) -> (i32, i32, i32, i32) {
    %c0_i32 = arith.constant 0 : i32
    %c0_i32_0 = arith.constant 0 : i32
    %c0_i32_1 = arith.constant 0 : i32
    return %arg0, %c0_i32, %arg1, %c0_i32_0 : i32, i32, i32, i32
  }
  func.func @transform_4(%arg0: i32, %arg1: i32) -> (i32, i32, i32, i32) {
    %c0_i32 = arith.constant 0 : i32
    %c0_i32_0 = arith.constant 0 : i32
    %c0_i32_1 = arith.constant 0 : i32
    return %arg0, %c0_i32, %arg1, %c0_i32_0 : i32, i32, i32, i32
  }
}

</mosaic_0001>

<bundles_post_ra>
// kernel: tpu_custom_call.1
= control target key start
LH: loop header
LB: loop body
LE: loop exit
PB: predicated region body
PF: predicated region fallthrough
CT: control target
= control target key end

     0   :  { %10 = vsyncpa [#allocation3], 0  ;;  %s5878_s0 = inlined_call_operand.vmem [shape: bf16[2,8,128], index: 0, kind: input, shape index: {}]   ;;  %s5879_s1 = inlined_call_operand.vmem [shape: bf16[3,8,128,64], index: 1, kind: input, shape index: {}]   ;;  %s5880_s2 = inlined_call_operand.hbm [shape: bf16[2,8,8,64], index: 2, kind: output, shape index: {0}]   ;;  %s5881_s3 = inlined_call_operand.hbm [shape: bf16[2,8,8,64], index: 3, kind: output, shape index: {1}]   ;;  %s5882_s4 = inlined_call_operand.hbm [shape: bf16[2,8,8,64], index: 4, kind: output, shape index: {2}]  }
   0x1   :  { %12 = vsyncpa [#allocation3 + $0x1], 0 }
   0x2   :  { %13 = vsyncpa [#allocation5], 0 }
   0x3   :  { %15 = vsyncpa [#allocation5 + $0x1], 0  ;;  %s4764_s15 = smov 0   ;;  %s4766_s16 = smov 0  }
   0x4   :  { %s4768_s17 = smov 0   ;;  %s4770_s18 = smov 0  }
   0x5   :  { %s4772_s19 = smov 0   ;;  %s4774_s20 = smov 0  }
   0x6 LB: > { %s3030_s21 = sadd.s32 4294967295, %s4730_s20   ;;  %s3031_s22 = sadd.s32 4294967294, %s4730_s20   ;;  %s4730_s20 = sphi %s4774_s20, %s21_s20   ;;  %s4726_s19 = sphi %s4772_s19, %s5889_s19   ;;  %s4722_s18 = sphi %s4770_s18, %s5888_s18   ;;  %s4718_s17 = sphi %s4768_s17, %s5887_s17   ;;  %s4714_s16 = sphi %s4766_s16, %s5886_s16   ;;  %s4710_s15 = sphi %s4764_s15, %s5885_s15  }
   0x7   : > { %s33_s23 = sadd.s32 1, %s4726_s19  ;;  %s91_s24 = sadd.s32 1, %s4718_s17 }
   0x8   : > { %p35_p0 = scmp.ge.s32.totalorder %s33_s23, 2  ;;  %p101_p1 = scmp.ne.s32.totalorder %s4718_s17, %s4714_s16 }
   0x9   : > { %p102_p2 = scmp.eq.s32.totalorder %s3030_s21, 1  ;;  %p107_p3 = scmp.ne.s32.totalorder %s4714_s16, %s4710_s15 }
   0xa   : > { %s5891_s23 = smov (%p35_p0, %s33_s23), 0  ;;  %p108_p5 = scmp.eq.s32.totalorder %s3031_s22, 1 }
   0xb   : > { %p4806_p4 = por %p102_p2, %p101_p1  ;;  %s86_s26 = ssub.s32 %s4726_s19, %s5891_s23 }
   0xc   : > { %p3034_p6 = scmp.ge.s32.totalorder %s4730_s20, 1  ;;  %p89_p7 = scmp.eq.s32.totalorder %s86_s26, 0 }
   0xd   : > { %p4815_p8 = por %p108_p5, %p107_p3  ;;  %p195_p9 = scmp.lt.s32.totalorder %s4730_s20, 3 }
   0xe   : > { %s4821_s28 = scalar_select %p89_p7, %s4718_s17, %s91_s24  }
   0xf   : > { %p196_p10 = pnand %p3034_p6, %p195_p9 }
  0x10   : > { %v4399_v0 = vld [vmem:[%s5879_s1] sm:$0xff] (!%p196_p10)   ;;  %v4732_v1 = vmov (!%p196_p10), 0.0   ;;  %v4401_v3 = vld [vmem:[%s5879_s1 + $0x8] sm:$0xff] (!%p196_p10)   ;;  %vm4733_vm0 = vmmov (!%p196_p10), 0   ;;  %v4403_v5 = vld [vmem:[%s5879_s1 + $0x10] sm:$0xff] (!%p196_p10)   ;;  %p233_p11 = scmp.lt.s32.totalorder (!%p196_p10), %s4722_s18, 1 }
  0x11   : > { %199 = sbr.rel (%p196_p10) target bundleno = 652 (0x28c), region = 28  ;;  %3850 = vmatprep.subr.bf16.mxu0 (!%p196_p10), %v4732_v1  ;;  %3870 = vmatprep.subr.bf16.mxu1 (!%p196_p10), %v4732_v1  ;;  %v4400_v2 = vld [vmem:[%s5879_s1 + $0x200] sm:$0xff] (!%p196_p10)   ;;  %v4402_v4 = vld [vmem:[%s5879_s1 + $0x208] sm:$0xff] (!%p196_p10)   ;;  %v4404_v6 = vld [vmem:[%s5879_s1 + $0x210] sm:$0xff] (!%p196_p10)   ;;  %vm347_vm1 = vcmask (!%p196_p10), 519168   ;;  %s4734_s7 = smov (!%p196_p10), [#allocation2]  }
  0x12   : > { %3851 = vmatpush3.bf16.msra.mxu0 (!%p196_p10), %v4399_v0  ;;  %3866 = vmatprep.mubr.msk.bf16.mxu0 (!%p196_p10), %vm4733_vm0, %v4732_v1  ;;  %v4405_v7 = vld [vmem:[%s5879_s1 + $0x18] sm:$0xff] (!%p196_p10)   ;;  %v4407_v9 = vld [vmem:[%s5879_s1 + $0x20] sm:$0xff] (!%p196_p10)   ;;  %v4409_v11 = vld [vmem:[%s5879_s1 + $0x28] sm:$0xff] (!%p196_p10)   ;;  %s4596_s8 = sshll.u32 (!%p196_p10), %s4734_s7, 4  ;;  %s4597_s8 = int_to_ptr.vmem [resolvable:$false] %s4596_s8 }
  0x13   : > { %3871 = vmatpush3.bf16.msra.mxu1 (!%p196_p10), %v4400_v2  ;;  %3852 = vmatprep.subr.bf16.mxu0 (!%p196_p10), %v4732_v1  ;;  %v4406_v8 = vld [vmem:[%s5879_s1 + $0x218] sm:$0xff] (!%p196_p10)   ;;  %v4408_v10 = vld [vmem:[%s5879_s1 + $0x220] sm:$0xff] (!%p196_p10)   ;;  %v4410_v12 = vld [vmem:[%s5879_s1 + $0x228] sm:$0xff] (!%p196_p10)   ;;  %s4598_s12 = scalar_lea.vmem (!%p196_p10), %s4597_s8, 1024 }
  0x14   : > { %3872 = vmatprep.subr.bf16.mxu1 (!%p196_p10), %v4732_v1  ;;  %3886 = vmatprep.mubr.msk.bf16.mxu1 (!%p196_p10), %vm4733_vm0, %v4732_v1  ;;  %v4411_v13 = vld [vmem:[%s5879_s1 + $0x30] sm:$0xff] (!%p196_p10)   ;;  %v4413_v15 = vld [vmem:[%s5879_s1 + $0x38] sm:$0xff] (!%p196_p10)   ;;  %v4415_v18 = vld [vmem:[%s5879_s1 + $0x400] sm:$0xff] (!%p196_p10)  }
  0x15   : > { %v4412_v14 = vld [vmem:[%s5879_s1 + $0x230] sm:$0xff] (!%p196_p10)   ;;  %v4414_v16 = vld [vmem:[%s5879_s1 + $0x238] sm:$0xff] (!%p196_p10)   ;;  %v4416_v19 = vld [vmem:[%s5879_s1 + $0x40] sm:$0xff] (!%p196_p10)  }
  0x16   : > { %3853 = vmatpush3.bf16.msra.mxu0 (!%p196_p10), %v4401_v3  ;;  %v4417_v20 = vld [vmem:[%s5879_s1 + $0x408] sm:$0xff] (!%p196_p10)   ;;  %v4419_v22 = vld [vmem:[%s5879_s1 + $0x410] sm:$0xff] (!%p196_p10)   ;;  %v4421_v24 = vld [vmem:[%s5879_s1 + $0x418] sm:$0xff] (!%p196_p10)  }
  0x17   : > { %3873 = vmatpush3.bf16.msra.mxu1 (!%p196_p10), %v4402_v4  ;;  %3854 = vmatprep.subr.bf16.mxu0 (!%p196_p10), %v4732_v1  ;;  %v4418_v21 = vld [vmem:[%s5879_s1 + $0x48] sm:$0xff] (!%p196_p10)   ;;  %v4420_v23 = vld [vmem:[%s5879_s1 + $0x50] sm:$0xff] (!%p196_p10)   ;;  %v4422_v25 = vld [vmem:[%s5879_s1 + $0x58] sm:$0xff] (!%p196_p10)  }
  0x18   : > { %3874 = vmatprep.subr.bf16.mxu1 %v4732_v1  ;;  %s234_s13 = scalar_select %p233_p11, %s4722_s18, 1  ;;  %v4423_v26 = vld [vmem:[%s5879_s1 + $0x420] sm:$0xff]   ;;  %v4425_v28 = vld [vmem:[%s5879_s1 + $0x428] sm:$0xff]   ;;  %v4427_v30 = vld [vmem:[%s5879_s1 + $0x430] sm:$0xff]  }
  0x19   : > { %v4424_v27 = vld [vmem:[%s5879_s1 + $0x60] sm:$0xff]   ;;  %v4426_v29 = vld [vmem:[%s5879_s1 + $0x68] sm:$0xff]   ;;  %v4428_v31 = vld [vmem:[%s5879_s1 + $0x70] sm:$0xff]  }
  0x1a   : > { %3855 = vmatpush3.bf16.msra.mxu0 %v4403_v5  ;;  %s3038_s30 = sshll.u32 %s234_s13, 2  ;;  %v4429_v32 = vld [vmem:[%s5879_s1 + $0x438] sm:$0xff]   ;;  %v4431_v34 = vld [vmem:[%s5879_s1 + $0x240] sm:$0xff]   ;;  %v4433_v36 = vld [vmem:[%s5879_s1 + $0x248] sm:$0xff]  }
  0x1b   : > { %3875 = vmatpush3.bf16.msra.mxu1 %v4404_v6  ;;  %3856 = vmatprep.subr.bf16.mxu0 %v4732_v1  ;;  %s4891_s9 = scalar_lea.vmem %s5878_s0, %s3038_s30  ;;  %v4430_v33 = vld [vmem:[%s5879_s1 + $0x78] sm:$0xff]   ;;  %v4432_v35 = vld [vmem:[%s5879_s1 + $0x440] sm:$0xff]   ;;  %v4434_v37 = vld [vmem:[%s5879_s1 + $0x448] sm:$0xff]  }
  0x1c   : > { %3876 = vmatprep.subr.bf16.mxu1 %v4732_v1  ;;  %v4899_v17 = vld [vmem:[%s4891_s9] sm:$0xf]  ;;  %v4435_v38 = vld [vmem:[%s5879_s1 + $0x250] sm:$0xff]   ;;  %v4437_v40 = vld [vmem:[%s5879_s1 + $0x258] sm:$0xff]  }
  0x1d   : > { %v4436_v39 = vld [vmem:[%s5879_s1 + $0x450] sm:$0xff]   ;;  %v4438_v41 = vld [vmem:[%s5879_s1 + $0x458] sm:$0xff]   ;;  %v4439_v42 = vld [vmem:[%s5879_s1 + $0x260] sm:$0xff]  }
  0x1e   : > { %3857 = vmatpush3.bf16.msra.mxu0 %v4405_v7  ;;  %v4440_v43 = vld [vmem:[%s5879_s1 + $0x460] sm:$0xff]   ;;  %v4441_v44 = vld [vmem:[%s5879_s1 + $0x268] sm:$0xff]   ;;  %v4443_v46 = vld [vmem:[%s5879_s1 + $0x270] sm:$0xff]  }
  0x1f   : > { %3877 = vmatpush3.bf16.msra.mxu1 %v4406_v8  ;;  %3858 = vmatprep.subr.bf16.mxu0 %v4732_v1  ;;  %v4442_v45 = vld [vmem:[%s5879_s1 + $0x468] sm:$0xff]   ;;  %v4444_v47 = vld [vmem:[%s5879_s1 + $0x470] sm:$0xff]   ;;  %v4445_v48 = vld [vmem:[%s5879_s1 + $0x278] sm:$0xff]  }
  0x20   : > { %3878 = vmatprep.subr.bf16.mxu1 %v4732_v1  ;;  %v4446_v49 = vld [vmem:[%s5879_s1 + $0x478] sm:$0xff]   ;;  %v4447_v50 = vld [vmem:[%s5879_s1 + $0x80] sm:$0xff]   ;;  %v4449_v52 = vld [vmem:[%s5879_s1 + $0x88] sm:$0xff]  }
  0x21   : > { %v4448_v51 = vld [vmem:[%s5879_s1 + $0x280] sm:$0xff]   ;;  %v4450_v53 = vld [vmem:[%s5879_s1 + $0x288] sm:$0xff]   ;;  %v4451_v54 = vld [vmem:[%s5879_s1 + $0x90] sm:$0xff]  }
  0x22   : > { %3859 = vmatpush3.bf16.msra.mxu0 %v4407_v9  ;;  %v4452_v55 = vld [vmem:[%s5879_s1 + $0x290] sm:$0xff]   ;;  %v4453_v56 = vld [vmem:[%s5879_s1 + $0x98] sm:$0xff]   ;;  %v4455_v58 = vld [vmem:[%s5879_s1 + $0xa0] sm:$0xff]  }
  0x23   : > { %3879 = vmatpush3.bf16.msra.mxu1 %v4408_v10  ;;  %3860 = vmatprep.subr.bf16.mxu0 %v4732_v1  ;;  %v4454_v57 = vld [vmem:[%s5879_s1 + $0x298] sm:$0xff]   ;;  %v4456_v59 = vld [vmem:[%s5879_s1 + $0x2a0] sm:$0xff]   ;;  %v4457_v60 = vld [vmem:[%s5879_s1 + $0xa8] sm:$0xff]  }
  0x24   : > { %3880 = vmatprep.subr.bf16.mxu1 %v4732_v1  ;;  %v4458_v61 = vld [vmem:[%s5879_s1 + $0x2a8] sm:$0xff]   ;;  %v4459_v62 = vld [vmem:[%s5879_s1 + $0xb0] sm:$0xff]   ;;  %v4461_v0 = vld [vmem:[%s5879_s1 + $0xb8] sm:$0xff]  }
  0x25   : > { %v4460_v63 = vld [vmem:[%s5879_s1 + $0x2b0] sm:$0xff]   ;;  %v4462_v2 = vld [vmem:[%s5879_s1 + $0x2b8] sm:$0xff]   ;;  %v4463_v3 = vld [vmem:[%s5879_s1 + $0x480] sm:$0xff]  }
  0x26   : > { %3861 = vmatpush3.bf16.msra.mxu0 %v4409_v11  ;;  %v4464_v4 = vld [vmem:[%s5879_s1 + $0xc0] sm:$0xff]   ;;  %v4465_v5 = vld [vmem:[%s5879_s1 + $0x488] sm:$0xff]   ;;  %v4467_v7 = vld [vmem:[%s5879_s1 + $0x490] sm:$0xff]  }
  0x27   : > { %3881 = vmatpush3.bf16.msra.mxu1 %v4410_v12  ;;  %3862 = vmatprep.subr.bf16.mxu0 %v4732_v1  ;;  %v4466_v6 = vld [vmem:[%s5879_s1 + $0xc8] sm:$0xff]   ;;  %v4468_v8 = vld [vmem:[%s5879_s1 + $0xd0] sm:$0xff]   ;;  %v4469_v9 = vld [vmem:[%s5879_s1 + $0x498] sm:$0xff]  }
  0x28   : > { %3882 = vmatprep.subr.bf16.mxu1 %v4732_v1  ;;  %v4470_v10 = vld [vmem:[%s5879_s1 + $0xd8] sm:$0xff]   ;;  %v4471_v11 = vld [vmem:[%s5879_s1 + $0x4a0] sm:$0xff]  }
  0x29   : > { %v4472_v12 = vld [vmem:[%s5879_s1 + $0xe0] sm:$0xff]  }
  0x2a   : > { %3863 = vmatpush3.bf16.msra.mxu0 %v4411_v13  ;;  %v4473_v13 = vld [vmem:[%s5879_s1 + $0x4a8] sm:$0xff]  }
  0x2b   : > { %3883 = vmatpush3.bf16.msra.mxu1 %v4412_v14  ;;  %3864 = vmatprep.subr.bf16.mxu0 %v4732_v1  ;;  %v4474_v14 = vld [vmem:[%s5879_s1 + $0xe8] sm:$0xff]  }
  0x2c   : > { %3884 = vmatprep.subr.bf16.mxu1 %v4732_v1 }
  0x2e   : > { %3865 = vmatpush3.bf16.msra.mxu0 %v4413_v15  ;;  %v4475_v15 = vld [vmem:[%s5879_s1 + $0x4b0] sm:$0xff]  }
  0x2f   : > { %3885 = vmatpush3.bf16.msra.mxu1 %v4414_v16  ;;  %3890 = vmatprep.subr.bf16.mxu0 %v4732_v1  ;;  %v4476_v16 = vld [vmem:[%s5879_s1 + $0xf0] sm:$0xff]  }
  0x30   : > { %3910 = vmatprep.subr.bf16.mxu1 %v4732_v1 }
  0x31   : > { %3867 = vmatmul.mubr.bf16.vlgmr.msra.gmra.mrb[0].mxu0 %v4899_v17 }
  0x32   : > { %3887 = vmatmul.mubr.bf16.vlgmr.msra.gmra.mrb[0].mxu1 %v4899_v17  ;;  %3891 = vmatpush3.bf16.msra.mxu0 %v4415_v18  ;;  %v4477_v18 = vld [vmem:[%s5879_s1 + $0x4b8] sm:$0xff]  }
  0x33   : > { %3911 = vmatpush3.bf16.msra.mxu1 %v4416_v19  ;;  %3892 = vmatprep.subr.bf16.mxu0 %v4732_v1  ;;  %v4478_v19 = vld [vmem:[%s5879_s1 + $0xf8] sm:$0xff]  }
  0x34   : > { %3912 = vmatprep.subr.bf16.mxu1 %v4732_v1  ;;  %3906 = vmatprep.mubr.msk.bf16.mxu0 %vm4733_vm0, %v4732_v1 }
  0x35   : > { %3926 = vmatprep.mubr.msk.bf16.mxu1 %vm4733_vm0, %v4732_v1 }
  0x36   : > { %3893 = vmatpush3.bf16.msra.mxu0 %v4417_v20  ;;  %v4479_v20 = vld [vmem:[%s5879_s1 + $0x2c0] sm:$0xff]  }
  0x37   : > { %3913 = vmatpush3.bf16.msra.mxu1 %v4418_v21  ;;  %3894 = vmatprep.subr.bf16.mxu0 %v4732_v1  ;;  %v4480_v21 = vld [vmem:[%s5879_s1 + $0x4c0] sm:$0xff]  }
  0x38   : > { %3914 = vmatprep.subr.bf16.mxu1 %v4732_v1 }
  0x3a   : > { %3895 = vmatpush3.bf16.msra.mxu0 %v4419_v22  ;;  %v4481_v22 = vld [vmem:[%s5879_s1 + $0x2c8] sm:$0xff]  }
  0x3b   : > { %3915 = vmatpush3.bf16.msra.mxu1 %v4420_v23  ;;  %3896 = vmatprep.subr.bf16.mxu0 %v4732_v1  ;;  %v4482_v23 = vld [vmem:[%s5879_s1 + $0x4c8] sm:$0xff]  }
  0x3c   : > { %3916 = vmatprep.subr.bf16.mxu1 %v4732_v1 }
  0x3e   : > { %3897 = vmatpush3.bf16.msra.mxu0 %v4421_v24  ;;  %v4483_v24 = vld [vmem:[%s5879_s1 + $0x2d0] sm:$0xff]  }
  0x3f   : > { %3917 = vmatpush3.bf16.msra.mxu1 %v4422_v25  ;;  %3898 = vmatprep.subr.bf16.mxu0 %v4732_v1  ;;  %v4484_v25 = vld [vmem:[%s5879_s1 + $0x4d0] sm:$0xff]  }
  0x40   : > { %3918 = vmatprep.subr.bf16.mxu1 %v4732_v1 }
  0x42   : > { %3899 = vmatpush3.bf16.msra.mxu0 %v4423_v26  ;;  %v4486_v26 = vld [vmem:[%s5879_s1 + $0x4d8] sm:$0xff]  }
  0x43   : > { %3919 = vmatpush3.bf16.msra.mxu1 %v4424_v27  ;;  %3900 = vmatprep.subr.bf16.mxu0 %v4732_v1  ;;  %v4487_v27 = vld [vmem:[%s5879_s1 + $0x2e0] sm:$0xff]  }
  0x44   : > { %3920 = vmatprep.subr.bf16.mxu1 %v4732_v1 }
  0x46   : > { %3901 = vmatpush3.bf16.msra.mxu0 %v4425_v28  ;;  %v4488_v28 = vld [vmem:[%s5879_s1 + $0x4e0] sm:$0xff]  }
  0x47   : > { %3921 = vmatpush3.bf16.msra.mxu1 %v4426_v29  ;;  %3902 = vmatprep.subr.bf16.mxu0 %v4732_v1  ;;  %v4489_v29 = vld [vmem:[%s5879_s1 + $0x2e8] sm:$0xff]  }
  0x48   : > { %3922 = vmatprep.subr.bf16.mxu1 %v4732_v1 }
  0x4a   : > { %3903 = vmatpush3.bf16.msra.mxu0 %v4427_v30  ;;  %v4490_v30 = vld [vmem:[%s5879_s1 + $0x4e8] sm:$0xff]  }
  0x4b   : > { %3923 = vmatpush3.bf16.msra.mxu1 %v4428_v31  ;;  %3904 = vmatprep.subr.bf16.mxu0 %v4732_v1  ;;  %v4491_v31 = vld [vmem:[%s5879_s1 + $0x2f0] sm:$0xff]  }
  0x4c   : > { %3924 = vmatprep.subr.bf16.mxu1 %v4732_v1 }
  0x4e   : > { %3905 = vmatpush3.bf16.msra.mxu0 %v4429_v32  ;;  %v4492_v32 = vld [vmem:[%s5879_s1 + $0x4f0] sm:$0xff]  }
  0x4f   : > { %3925 = vmatpush3.bf16.msra.mxu1 %v4430_v33  ;;  %3930 = vmatprep.subr.bf16.mxu0 %v4732_v1  ;;  %v4493_v33 = vld [vmem:[%s5879_s1 + $0x2f8] sm:$0xff]  }
  0x50   : > { %3950 = vmatprep.subr.bf16.mxu1 %v4732_v1 }
  0x51   : > { %3907 = vmatmul.mubr.bf16.vlgmr.msra.gmra.mrb[4].mxu0 %v4899_v17 }
  0x52   : > { %3927 = vmatmul.mubr.bf16.vlgmr.msra.gmra.mrb[4].mxu1 %v4899_v17  ;;  %3931 = vmatpush3.bf16.msra.mxu0 %v4431_v34  ;;  %v4494_v34 = vld [vmem:[%s5879_s1 + $0x4f8] sm:$0xff]  }
  0x53   : > { %3951 = vmatpush3.bf16.msra.mxu1 %v4432_v35  ;;  %3932 = vmatprep.subr.bf16.mxu0 %v4732_v1  ;;  %v4495_v35 = vld [vmem:[%s5879_s1 + $0x100] sm:$0xff]  }
  0x54   : > { %3952 = vmatprep.subr.bf16.mxu1 %v4732_v1  ;;  %3946 = vmatprep.mubr.msk.bf16.mxu0 %vm4733_vm0, %v4732_v1 }
  0x55   : > { %3966 = vmatprep.mubr.msk.bf16.mxu1 %vm4733_vm0, %v4732_v1 }
  0x56   : > { %3933 = vmatpush3.bf16.msra.mxu0 %v4433_v36  ;;  %v4496_v36 = vld [vmem:[%s5879_s1 + $0x300] sm:$0xff]  }
  0x57   : > { %3953 = vmatpush3.bf16.msra.mxu1 %v4434_v37  ;;  %3934 = vmatprep.subr.bf16.mxu0 %v4732_v1  ;;  %v5260_v37 = vld [vmem:[%s4891_s9] sm:$0xf]  ;;  %s216_s9 = sand.u32 1, %s4714_s16  }
  0x58   : > { %3954 = vmatprep.subr.bf16.mxu1 %v4732_v1  ;;  %s5373_s13 = sshll.u32 %s216_s9, 5 }
  0x59   : > { %s5387_s6 = scalar_lea.vmem [#allocation2], %s5373_s13  ;;  %s5396_s10 = scalar_lea.vmem [#allocation4], %s5373_s13 }
  0x5a   : > { %3935 = vmatpush3.bf16.msra.mxu0 %v4435_v38  ;;  %v4497_v38 = vld [vmem:[%s5879_s1 + $0x108] sm:$0xff]   ;;  %s5467_s11 = scalar_lea.vmem [#allocation6], %s5373_s13  ;;  %s5731_s13 = sshll.u32 %s4722_s18, 9 }
  0x5b   : > { %3955 = vmatpush3.bf16.msra.mxu1 %v4436_v39  ;;  %3936 = vmatprep.subr.bf16.mxu0 %v4732_v1  ;;  %v4498_v39 = vld [vmem:[%s5879_s1 + $0x308] sm:$0xff]   ;;  %s2856_s24 = sshll.u32 %s5387_s6, 4  ;;  %s5738_s30 = scalar_lea.hbm %s5880_s2, %s5731_s13  ;;  %s5740_s24 = int_to_ptr.vmem [resolvable:$true] %s2856_s24 }
  0x5c   : > { %3956 = vmatprep.subr.bf16.mxu1 %v4732_v1  ;;  %s5748_s18 = scalar_lea.sflag [#allocation3], %s216_s9  ;;  %s4592_s5 = scalar_lea.vmem %s5740_s24, 512 }
  0x5d   : > { %p4593_p12 = scmp.ne.s32.totalorder %s5740_s24, %s4592_s5  ;;  %p4599_p1 = scmp.lt.s32.totalorder %s5740_s24, %s4597_s8 }
  0x5e   : > { %3937 = vmatpush3.bf16.msra.mxu0 %v4437_v40  ;;  %v4499_v40 = vld [vmem:[%s5879_s1 + $0x110] sm:$0xff]   ;;  %p4600_p2 = scmp.lt.s32.totalorder %s4598_s12, %s4592_s5 }
  0x5f   : > { %3957 = vmatpush3.bf16.msra.mxu1 %v4438_v41  ;;  %3938 = vmatprep.subr.bf16.mxu0 %v4732_v1  ;;  %v4500_v41 = vld [vmem:[%s5879_s1 + $0x310] sm:$0xff]   ;;  %p4594_p13 = pnand %p4593_p12, %p4806_p4 }
  0x60   : > { %3958 = vmatprep.subr.bf16.mxu1 %v4732_v1  ;;  %p4601_p3 = por %p4600_p2, %p4599_p1 }
  0x61   : > { %p4595_p0 = pneg %p4594_p13 }
  0x62   : > { %3939 = vmatpush3.bf16.msra.mxu0 %v4439_v42  ;;  %v4501_v42 = vld [vmem:[%s5879_s1 + $0x118] sm:$0xff]  }
  0x63   : > { %3959 = vmatpush3.bf16.msra.mxu1 %v4440_v43  ;;  %3940 = vmatprep.subr.bf16.mxu0 %v4732_v1  ;;  %v4502_v43 = vld [vmem:[%s5879_s1 + $0x318] sm:$0xff]   ;;  %p4602_p5 = pnand %p4601_p3, %p4595_p0 }
  0x64   : > { %3960 = vmatprep.subr.bf16.mxu1 %v4732_v1 }
  0x66   : > { %3941 = vmatpush3.bf16.msra.mxu0 %v4441_v44  ;;  %v4503_v44 = vld [vmem:[%s5879_s1 + $0x120] sm:$0xff]  }
  0x67   : > { %3961 = vmatpush3.bf16.msra.mxu1 %v4442_v45  ;;  %3942 = vmatprep.subr.bf16.mxu0 %v4732_v1  ;;  %v4504_v45 = vld [vmem:[%s5879_s1 + $0x320] sm:$0xff]  }
  0x68   : > { %3962 = vmatprep.subr.bf16.mxu1 %v4732_v1 }
  0x6a   : > { %3943 = vmatpush3.bf16.msra.mxu0 %v4443_v46  ;;  %v4505_v46 = vld [vmem:[%s5879_s1 + $0x128] sm:$0xff]  }
  0x6b   : > { %3963 = vmatpush3.bf16.msra.mxu1 %v4444_v47  ;;  %3944 = vmatprep.subr.bf16.mxu0 %v4732_v1  ;;  %v4506_v47 = vld [vmem:[%s5879_s1 + $0x328] sm:$0xff]  }
  0x6c   : > { %3964 = vmatprep.subr.bf16.mxu1 %v4732_v1 }
  0x6e   : > { %3945 = vmatpush3.bf16.msra.mxu0 %v4445_v48  ;;  %v4507_v48 = vld [vmem:[%s5879_s1 + $0x130] sm:$0xff]  }
  0x6f   : > { %3965 = vmatpush3.bf16.msra.mxu1 %v4446_v49  ;;  %3970 = vmatprep.subr.bf16.mxu0 %v4732_v1  ;;  %v4508_v49 = vld [vmem:[%s5879_s1 + $0x330] sm:$0xff]  }
  0x70   : > { %3990 = vmatprep.subr.bf16.mxu1 %v4732_v1 }
  0x71   : > { %3947 = vmatmul.mubr.bf16.vlgmr.msra.gmra.mrb[8].mxu0 %v4899_v17 }
  0x72   : > { %3967 = vmatmul.mubr.bf16.vlgmr.msra.gmra.mrb[8].mxu1 %v4899_v17  ;;  %3971 = vmatpush3.bf16.msra.mxu0 %v4447_v50  ;;  %v4509_v50 = vld [vmem:[%s5879_s1 + $0x138] sm:$0xff]  }
  0x73   : > { %3991 = vmatpush3.bf16.msra.mxu1 %v4448_v51  ;;  %3972 = vmatprep.subr.bf16.mxu0 %v4732_v1  ;;  %v4510_v51 = vld [vmem:[%s5879_s1 + $0x338] sm:$0xff]  }
  0x74   : > { %3992 = vmatprep.subr.bf16.mxu1 %v4732_v1  ;;  %3986 = vmatprep.mubr.msk.bf16.mxu0 %vm4733_vm0, %v4732_v1 }
  0x75   : > { %4006 = vmatprep.mubr.msk.bf16.mxu1 %vm4733_vm0, %v4732_v1 }
  0x76   : > { %3973 = vmatpush3.bf16.msra.mxu0 %v4449_v52  ;;  %v4511_v52 = vld [vmem:[%s5879_s1 + $0x500] sm:$0xff]  }
  0x77   : > { %3993 = vmatpush3.bf16.msra.mxu1 %v4450_v53  ;;  %3974 = vmatprep.subr.bf16.mxu0 %v4732_v1  ;;  %v4512_v53 = vld [vmem:[%s5879_s1 + $0x140] sm:$0xff]  }
  0x78   : > { %3994 = vmatprep.subr.bf16.mxu1 %v4732_v1 }
  0x7a   : > { %3975 = vmatpush3.bf16.msra.mxu0 %v4451_v54  ;;  %v4513_v54 = vld [vmem:[%s5879_s1 + $0x508] sm:$0xff]  }
  0x7b   : > { %3995 = vmatpush3.bf16.msra.mxu1 %v4452_v55  ;;  %3976 = vmatprep.subr.bf16.mxu0 %v4732_v1  ;;  %v4514_v55 = vld [vmem:[%s5879_s1 + $0x148] sm:$0xff]  }
  0x7c   : > { %3996 = vmatprep.subr.bf16.mxu1 %v4732_v1 }
  0x7e   : > { %3977 = vmatpush3.bf16.msra.mxu0 %v4453_v56  ;;  %v4515_v56 = vld [vmem:[%s5879_s1 + $0x510] sm:$0xff]  }
  0x7f   : > { %3997 = vmatpush3.bf16.msra.mxu1 %v4454_v57  ;;  %3978 = vmatprep.subr.bf16.mxu0 %v4732_v1  ;;  %v4516_v57 = vld [vmem:[%s5879_s1 + $0x150] sm:$0xff]  }
  0x80   : > { %3998 = vmatprep.subr.bf16.mxu1 %v4732_v1 }
  0x82   : > { %3979 = vmatpush3.bf16.msra.mxu0 %v4455_v58  ;;  %v4517_v58 = vld [vmem:[%s5879_s1 + $0x518] sm:$0xff]  }
  0x83   : > { %3999 = vmatpush3.bf16.msra.mxu1 %v4456_v59  ;;  %3980 = vmatprep.subr.bf16.mxu0 %v4732_v1  ;;  %v4518_v59 = vld [vmem:[%s5879_s1 + $0x158] sm:$0xff]  }
  0x84   : > { %4000 = vmatprep.subr.bf16.mxu1 %v4732_v1 }
  0x86   : > { %3981 = vmatpush3.bf16.msra.mxu0 %v4457_v60  ;;  %v4519_v60 = vld [vmem:[%s5879_s1 + $0x520] sm:$0xff]  }
  0x87   : > { %4001 = vmatpush3.bf16.msra.mxu1 %v4458_v61  ;;  %3982 = vmatprep.subr.bf16.mxu0 %v4732_v1  ;;  %v4520_v61 = vld [vmem:[%s5879_s1 + $0x160] sm:$0xff]  }
  0x88   : > { %4002 = vmatprep.subr.bf16.mxu1 %v4732_v1 }
  0x8a   : > { %3983 = vmatpush3.bf16.msra.mxu0 %v4459_v62  ;;  %v4521_v62 = vld [vmem:[%s5879_s1 + $0x528] sm:$0xff]  }
  0x8b   : > { %4003 = vmatpush3.bf16.msra.mxu1 %v4460_v63  ;;  %3984 = vmatprep.subr.bf16.mxu0 %v4732_v1  ;;  %v4522_v63 = vld [vmem:[%s5879_s1 + $0x168] sm:$0xff]  }
  0x8c   : > { %4004 = vmatprep.subr.bf16.mxu1 %v4732_v1 }
  0x8e   : > { %3985 = vmatpush3.bf16.msra.mxu0 %v4461_v0 }
  0x8f   : > { %4005 = vmatpush3.bf16.msra.mxu1 %v4462_v2  ;;  %4010 = vmatprep.subr.bf16.mxu0 %v4732_v1 }
  0x90   : > { %4030 = vmatprep.subr.bf16.mxu1 %v4732_v1 }
  0x91   : > { %3987 = vmatmul.mubr.bf16.vlgmr.msra.gmra.mrb[12].mxu0 %v4899_v17 }
  0x92   : > { %4007 = vmatmul.mubr.bf16.vlgmr.msra.gmra.mrb[12].mxu1 %v4899_v17  ;;  %4011 = vmatpush3.bf16.msra.mxu0 %v4463_v3 }
  0x93   : > { %4031 = vmatpush3.bf16.msra.mxu1 %v4464_v4  ;;  %4012 = vmatprep.subr.bf16.mxu0 %v4732_v1 }
  0x94   : > { %4032 = vmatprep.subr.bf16.mxu1 %v4732_v1  ;;  %4026 = vmatprep.mubr.msk.bf16.mxu0 %vm4733_vm0, %v4732_v1 }
  0x95   : > { %4046 = vmatprep.mubr.msk.bf16.mxu1 %vm4733_vm0, %v4732_v1 }
  0x96   : > { %4013 = vmatpush3.bf16.msra.mxu0 %v4465_v5 }
  0x97   : > { %4033 = vmatpush3.bf16.msra.mxu1 %v4466_v6  ;;  %4014 = vmatprep.subr.bf16.mxu0 %v4732_v1 }
  0x98   : > { %4034 = vmatprep.subr.bf16.mxu1 %v4732_v1 }
  0x9a   : > { %4015 = vmatpush3.bf16.msra.mxu0 %v4467_v7 }
  0x9b   : > { %4035 = vmatpush3.bf16.msra.mxu1 %v4468_v8  ;;  %4016 = vmatprep.subr.bf16.mxu0 %v4732_v1  ;;  %v4523_v8 = vld [vmem:[%s5879_s1 + $0x530] sm:$0xff]  }
  0x9c   : > { %4036 = vmatprep.subr.bf16.mxu1 %v4732_v1 }
  0x9e   : > { %4017 = vmatpush3.bf16.msra.mxu0 %v4469_v9 }
  0x9f   : > { %4037 = vmatpush3.bf16.msra.mxu1 %v4470_v10  ;;  %4018 = vmatprep.subr.bf16.mxu0 %v4732_v1 }
  0xa0   : > { %4038 = vmatprep.subr.bf16.mxu1 %v4732_v1 }
  0xa2   : > { %4019 = vmatpush3.bf16.msra.mxu0 %v4471_v11  ;;  %v4524_v11 = vld [vmem:[%s5879_s1 + $0x170] sm:$0xff]  }
  0xa3   : > { %4039 = vmatpush3.bf16.msra.mxu1 %v4472_v12  ;;  %4020 = vmatprep.subr.bf16.mxu0 %v4732_v1 }
  0xa4   : > { %4040 = vmatprep.subr.bf16.mxu1 %v4732_v1 }
  0xa6   : > { %4021 = vmatpush3.bf16.msra.mxu0 %v4473_v13  ;;  %v4525_v13 = vld [vmem:[%s5879_s1 + $0x538] sm:$0xff]  }
  0xa7   : > { %4041 = vmatpush3.bf16.msra.mxu1 %v4474_v14  ;;  %4022 = vmatprep.subr.bf16.mxu0 %v4732_v1  ;;  %v4526_v14 = vld [vmem:[%s5879_s1 + $0x178] sm:$0xff]  }
  0xa8   : > { %4042 = vmatprep.subr.bf16.mxu1 %v4732_v1 }
  0xaa   : > { %4023 = vmatpush3.bf16.msra.mxu0 %v4475_v15  ;;  %v4527_v15 = vld [vmem:[%s5879_s1 + $0x340] sm:$0xff]  }
  0xab   : > { %4043 = vmatpush3.bf16.msra.mxu1 %v4476_v16  ;;  %4024 = vmatprep.subr.bf16.mxu0 %v4732_v1  ;;  %v4528_v16 = vld [vmem:[%s5879_s1 + $0x540] sm:$0xff]  }
  0xac   : > { %4044 = vmatprep.subr.bf16.mxu1 %v4732_v1 }
  0xae   : > { %4025 = vmatpush3.bf16.msra.mxu0 %v4477_v18  ;;  %v4529_v18 = vld [vmem:[%s5879_s1 + $0x348] sm:$0xff]  }
  0xaf   : > { %4045 = vmatpush3.bf16.msra.mxu1 %v4478_v19  ;;  %4050 = vmatprep.subr.bf16.mxu0 %v4732_v1  ;;  %v4530_v19 = vld [vmem:[%s5879_s1 + $0x548] sm:$0xff]  }
  0xb0   : > { %4070 = vmatprep.subr.bf16.mxu1 %v4732_v1 }
  0xb1   : > { %4027 = vmatmul.mubr.bf16.vlgmr.msra.gmra.mrb[16].mxu0 %v4899_v17 }
  0xb2   : > { %4047 = vmatmul.mubr.bf16.vlgmr.msra.gmra.mrb[16].mxu1 %v4899_v17  ;;  %4051 = vmatpush3.bf16.msra.mxu0 %v4479_v20  ;;  %v4485_v17 = vld [vmem:[%s5879_s1 + $0x2d8] sm:$0xff]   ;;  %v4531_v20 = vld [vmem:[%s5879_s1 + $0x350] sm:$0xff]  }
  0xb3   : > { %4071 = vmatpush3.bf16.msra.mxu1 %v4480_v21  ;;  %4052 = vmatprep.subr.bf16.mxu0 %v4732_v1  ;;  %v4532_v21 = vld [vmem:[%s5879_s1 + $0x550] sm:$0xff]  }
  0xb4   : > { %4072 = vmatprep.subr.bf16.mxu1 %v4732_v1  ;;  %4066 = vmatprep.mubr.msk.bf16.mxu0 %vm4733_vm0, %v4732_v1 }
  0xb5   : > { %4086 = vmatprep.mubr.msk.bf16.mxu1 %vm4733_vm0, %v4732_v1 }
  0xb6   : > { %4053 = vmatpush3.bf16.msra.mxu0 %v4481_v22  ;;  %v4533_v22 = vld [vmem:[%s5879_s1 + $0x358] sm:$0xff]  }
  0xb7   : > { %4073 = vmatpush3.bf16.msra.mxu1 %v4482_v23  ;;  %4054 = vmatprep.subr.bf16.mxu0 %v4732_v1  ;;  %v4534_v23 = vld [vmem:[%s5879_s1 + $0x558] sm:$0xff]  }
  0xb8   : > { %4074 = vmatprep.subr.bf16.mxu1 %v4732_v1 }
  0xba   : > { %4055 = vmatpush3.bf16.msra.mxu0 %v4483_v24  ;;  %v4535_v24 = vld [vmem:[%s5879_s1 + $0x360] sm:$0xff]  }
  0xbb   : > { %4075 = vmatpush3.bf16.msra.mxu1 %v4484_v25  ;;  %4056 = vmatprep.subr.bf16.mxu0 %v4732_v1  ;;  %v4536_v25 = vld [vmem:[%s5879_s1 + $0x560] sm:$0xff]  }
  0xbc   : > { %4076 = vmatprep.subr.bf16.mxu1 %v4732_v1 }
  0xbe   : > { %4057 = vmatpush3.bf16.msra.mxu0 %v4485_v17  ;;  %v4537_v17 = vld [vmem:[%s5879_s1 + $0x368] sm:$0xff]  }
  0xbf   : > { %4077 = vmatpush3.bf16.msra.mxu1 %v4486_v26  ;;  %4058 = vmatprep.subr.bf16.mxu0 %v4732_v1  ;;  %v4538_v26 = vld [vmem:[%s5879_s1 + $0x568] sm:$0xff]  }
  0xc0   : > { %4078 = vmatprep.subr.bf16.mxu1 %v4732_v1 }
  0xc2   : > { %4059 = vmatpush3.bf16.msra.mxu0 %v4487_v27 }
  0xc3   : > { %4079 = vmatpush3.bf16.msra.mxu1 %v4488_v28  ;;  %4060 = vmatprep.subr.bf16.mxu0 %v4732_v1 }
  0xc4   : > { %4080 = vmatprep.subr.bf16.mxu1 %v4732_v1 }
  0xc6   : > { %4061 = vmatpush3.bf16.msra.mxu0 %v4489_v29 }
  0xc7   : > { %4081 = vmatpush3.bf16.msra.mxu1 %v4490_v30  ;;  %4062 = vmatprep.subr.bf16.mxu0 %v4732_v1 }
  0xc8   : > { %4082 = vmatprep.subr.bf16.mxu1 %v4732_v1 }
  0xca   : > { %4063 = vmatpush3.bf16.msra.mxu0 %v4491_v31 }
  0xcb   : > { %4083 = vmatpush3.bf16.msra.mxu1 %v4492_v32  ;;  %4064 = vmatprep.subr.bf16.mxu0 %v4732_v1 }
  0xcc   : > { %4084 = vmatprep.subr.bf16.mxu1 %v4732_v1 }
  0xce   : > { %4065 = vmatpush3.bf16.msra.mxu0 %v4493_v33 }
  0xcf   : > { %4085 = vmatpush3.bf16.msra.mxu1 %v4494_v34  ;;  %4090 = vmatprep.subr.bf16.mxu0 %v4732_v1  ;;  %v4539_v34 = vld [vmem:[%s5879_s1 + $0x370] sm:$0xff]  }
  0xd0   : > { %4110 = vmatprep.subr.bf16.mxu1 %v4732_v1 }
  0xd1   : > { %4067 = vmatmul.mubr.bf16.vlgmr.msra.gmra.mrb[20].mxu0 %v5260_v37 }
  0xd2   : > { %4087 = vmatmul.mubr.bf16.vlgmr.msra.gmra.mrb[20].mxu1 %v5260_v37  ;;  %4091 = vmatpush3.bf16.msra.mxu0 %v4495_v35 }
  0xd3   : > { %4111 = vmatpush3.bf16.msra.mxu1 %v4496_v36  ;;  %4092 = vmatprep.subr.bf16.mxu0 %v4732_v1 }
  0xd4   : > { %4112 = vmatprep.subr.bf16.mxu1 %v4732_v1  ;;  %4106 = vmatprep.mubr.msk.bf16.mxu0 %vm4733_vm0, %v4732_v1 }
  0xd5   : > { %4126 = vmatprep.mubr.msk.bf16.mxu1 %vm4733_vm0, %v4732_v1 }
  0xd6   : > { %4093 = vmatpush3.bf16.msra.mxu0 %v4497_v38  ;;  %v4540_v38 = vld [vmem:[%s5879_s1 + $0x570] sm:$0xff]  }
  0xd7   : > { %4113 = vmatpush3.bf16.msra.mxu1 %v4498_v39  ;;  %4094 = vmatprep.subr.bf16.mxu0 %v4732_v1 }
  0xd8   : > { %4114 = vmatprep.subr.bf16.mxu1 %v4732_v1 }
  0xda   : > { %4095 = vmatpush3.bf16.msra.mxu0 %v4499_v40  ;;  %v4541_v40 = vld [vmem:[%s5879_s1 + $0x378] sm:$0xff]  }
  0xdb   : > { %4115 = vmatpush3.bf16.msra.mxu1 %v4500_v41  ;;  %4096 = vmatprep.subr.bf16.mxu0 %v4732_v1  ;;  %v4542_v41 = vld [vmem:[%s5879_s1 + $0x578] sm:$0xff]  }
  0xdc   : > { %4116 = vmatprep.subr.bf16.mxu1 %v4732_v1 }
  0xde   : > { %4097 = vmatpush3.bf16.msra.mxu0 %v4501_v42  ;;  %v4543_v42 = vld [vmem:[%s5879_s1 + $0x180] sm:$0xff]  }
  0xdf   : > { %4117 = vmatpush3.bf16.msra.mxu1 %v4502_v43  ;;  %4098 = vmatprep.subr.bf16.mxu0 %v4732_v1  ;;  %v4544_v43 = vld [vmem:[%s5879_s1 + $0x380] sm:$0xff]  }
  0xe0   : > { %4118 = vmatprep.subr.bf16.mxu1 %v4732_v1 }
  0xe2   : > { %4099 = vmatpush3.bf16.msra.mxu0 %v4503_v44  ;;  %v4545_v44 = vld [vmem:[%s5879_s1 + $0x188] sm:$0xff]  }
  0xe3   : > { %4119 = vmatpush3.bf16.msra.mxu1 %v4504_v45  ;;  %4100 = vmatprep.subr.bf16.mxu0 %v4732_v1  ;;  %v4546_v45 = vld [vmem:[%s5879_s1 + $0x388] sm:$0xff]  }
  0xe4   : > { %4120 = vmatprep.subr.bf16.mxu1 %v4732_v1 }
  0xe6   : > { %4101 = vmatpush3.bf16.msra.mxu0 %v4505_v46  ;;  %v4547_v46 = vld [vmem:[%s5879_s1 + $0x190] sm:$0xff]  }
  0xe7   : > { %4121 = vmatpush3.bf16.msra.mxu1 %v4506_v47  ;;  %4102 = vmatprep.subr.bf16.mxu0 %v4732_v1  ;;  %v4548_v47 = vld [vmem:[%s5879_s1 + $0x390] sm:$0xff]  }
  0xe8   : > { %4122 = vmatprep.subr.bf16.mxu1 %v4732_v1 }
  0xea   : > { %4103 = vmatpush3.bf16.msra.mxu0 %v4507_v48  ;;  %v4549_v48 = vld [vmem:[%s5879_s1 + $0x198] sm:$0xff]  }
  0xeb   : > { %4123 = vmatpush3.bf16.msra.mxu1 %v4508_v49  ;;  %4104 = vmatprep.subr.bf16.mxu0 %v4732_v1  ;;  %v4550_v49 = vld [vmem:[%s5879_s1 + $0x398] sm:$0xff]  }
  0xec   : > { %4124 = vmatprep.subr.bf16.mxu1 %v4732_v1 }
  0xee   : > { %4105 = vmatpush3.bf16.msra.mxu0 %v4509_v50  ;;  %v4551_v50 = vld [vmem:[%s5879_s1 + $0x1a0] sm:$0xff]  }
  0xef   : > { %4125 = vmatpush3.bf16.msra.mxu1 %v4510_v51  ;;  %4130 = vmatprep.subr.bf16.mxu0 %v4732_v1  ;;  %v4552_v51 = vld [vmem:[%s5879_s1 + $0x3a0] sm:$0xff]  }
  0xf0   : > { %4150 = vmatprep.subr.bf16.mxu1 %v4732_v1 }
  0xf1   : > { %4107 = vmatmul.mubr.bf16.vlgmr.msra.gmra.mrb[24].mxu0 %v5260_v37 }
  0xf2   : > { %4127 = vmatmul.mubr.bf16.vlgmr.msra.gmra.mrb[24].mxu1 %v5260_v37  ;;  %4131 = vmatpush3.bf16.msra.mxu0 %v4511_v52  ;;  %v4553_v52 = vld [vmem:[%s5879_s1 + $0x1a8] sm:$0xff]  }
  0xf3   : > { %4151 = vmatpush3.bf16.msra.mxu1 %v4512_v53  ;;  %4132 = vmatprep.subr.bf16.mxu0 %v4732_v1  ;;  %v4554_v53 = vld [vmem:[%s5879_s1 + $0x3a8] sm:$0xff]  }
  0xf4   : > { %4152 = vmatprep.subr.bf16.mxu1 %v4732_v1  ;;  %4146 = vmatprep.mubr.msk.bf16.mxu0 %vm4733_vm0, %v4732_v1 }
  0xf5   : > { %4166 = vmatprep.mubr.msk.bf16.mxu1 %vm4733_vm0, %v4732_v1 }
  0xf6   : > { %4133 = vmatpush3.bf16.msra.mxu0 %v4513_v54 }
  0xf7   : > { %4153 = vmatpush3.bf16.msra.mxu1 %v4514_v55  ;;  %4134 = vmatprep.subr.bf16.mxu0 %v4732_v1 }
  0xf8   : > { %4154 = vmatprep.subr.bf16.mxu1 %v4732_v1 }
  0xfa   : > { %4135 = vmatpush3.bf16.msra.mxu0 %v4515_v56 }
  0xfb   : > { %4155 = vmatpush3.bf16.msra.mxu1 %v4516_v57  ;;  %4136 = vmatprep.subr.bf16.mxu0 %v4732_v1 }
  0xfc   : > { %4156 = vmatprep.subr.bf16.mxu1 %v4732_v1 }
  0xfe   : > { %4137 = vmatpush3.bf16.msra.mxu0 %v4517_v58 }
  0xff   : > { %4157 = vmatpush3.bf16.msra.mxu1 %v4518_v59  ;;  %4138 = vmatprep.subr.bf16.mxu0 %v4732_v1 }
 0x100   : > { %4158 = vmatprep.subr.bf16.mxu1 %v4732_v1 }
 0x102   : > { %4139 = vmatpush3.bf16.msra.mxu0 %v4519_v60 }
 0x103   : > { %4159 = vmatpush3.bf16.msra.mxu1 %v4520_v61  ;;  %4140 = vmatprep.subr.bf16.mxu0 %v4732_v1  ;;  %v4555_v61 = vld [vmem:[%s5879_s1 + $0x1b0] sm:$0xff]  }
 0x104   : > { %v340_v0 = vpop.f32.mrb[0].mxu0  ;;  %4160 = vmatprep.subr.bf16.mxu1 %v4732_v1 }
 0x105   : > { %v346_v2 = vpack.c.bf16 %v340_v0, %v340_v0  ;;  %v448_v3 = vpop.f32.mrb[0].mxu1  ;;  %v3868_v4 = vpop.f32.mrb[1].mxu0  ;;  %v4556_v0 = vld [vmem:[%s5879_s1 + $0x3b0] sm:$0xff]  }
 0x106   : > { %v454_v5 = vpack.c.bf16 %v448_v3, %v448_v3  ;;  %v3888_v6 = vpop.f32.mrb[1].mxu1  ;;  %v343_v7 = vpop.f32.mrb[2].mxu0  ;;  %4141 = vmatpush3.bf16.msra.mxu0 %v4521_v62  ;;  %v4557_v3 = vld [vmem:[%s5879_s1 + $0x1b8] sm:$0xff]  }
 0x107   : > { %348 = vst.msk [vmem:[%s5387_s6] sm:$0xf] %vm347_vm1, %v346_v2  ;;  %v451_v9 = vpop.f32.mrb[2].mxu1  ;;  %4161 = vmatpush3.bf16.msra.mxu1 %v4522_v63  ;;  %v3869_v10 = vpop.f32.mrb[3].mxu0  ;;  %4142 = vmatprep.subr.bf16.mxu0 %v4732_v1  ;;  %v4558_v4 = vld [vmem:[%s5879_s1 + $0x3b8] sm:$0xff]   ;;  %v4560_v6 = vld [vmem:[%s5879_s1 + $0x1c0] sm:$0xff]  }
 0x108   : > { %455 = vst.msk [vmem:[%s5396_s10] sm:$0xf] %vm347_vm1, %v454_v5  ;;  %v3889_v12 = vpop.f32.mrb[3].mxu1  ;;  %4162 = vmatprep.subr.bf16.mxu1 %v4732_v1  ;;  %v4559_v5 = vld [vmem:[%s5879_s1 + $0x580] sm:$0xff]   ;;  %v4561_v7 = vld [vmem:[%s5879_s1 + $0x588] sm:$0xff]   ;;  %v4563_v9 = vld [vmem:[%s5879_s1 + $0x590] sm:$0xff]  }
 0x109   : > { %v4564_v10 = vld [vmem:[%s5879_s1 + $0x1d0] sm:$0xff]   ;;  %v4566_v12 = vld [vmem:[%s5879_s1 + $0x1d8] sm:$0xff]  }
 0x10a   : > { %4143 = vmatpush3.bf16.msra.mxu0 %v4523_v8  ;;  %v4562_v8 = vld [vmem:[%s5879_s1 + $0x1c8] sm:$0xff]  }
 0x10b   : > { %4163 = vmatpush3.bf16.msra.mxu1 %v4524_v11  ;;  %4144 = vmatprep.subr.bf16.mxu0 %v4732_v1  ;;  %v4565_v11 = vld [vmem:[%s5879_s1 + $0x598] sm:$0xff]  }
 0x10c   : > { %4164 = vmatprep.subr.bf16.mxu1 %v4732_v1 }
 0x10e   : > { %4145 = vmatpush3.bf16.msra.mxu0 %v4525_v13  ;;  %v4567_v13 = vld [vmem:[%s5879_s1 + $0x5a0] sm:$0xff]  }
 0x10f   : > { %4165 = vmatpush3.bf16.msra.mxu1 %v4526_v14  ;;  %4170 = vmatprep.subr.bf16.mxu0 %v4732_v1  ;;  %v4568_v14 = vld [vmem:[%s5879_s1 + $0x1e0] sm:$0xff]  }
 0x110   : > { %4190 = vmatprep.subr.bf16.mxu1 %v4732_v1 }
 0x111   : > { %4147 = vmatmul.mubr.bf16.vlgmr.msra.gmra.mrb[28].mxu0 %v5260_v37 }
 0x112   : > { %4167 = vmatmul.mubr.bf16.vlgmr.msra.gmra.mrb[28].mxu1 %v5260_v37  ;;  %4171 = vmatpush3.bf16.msra.mxu0 %v4527_v15  ;;  %v4569_v15 = vld [vmem:[%s5879_s1 + $0x5a8] sm:$0xff]  }
 0x113   : > { %4191 = vmatpush3.bf16.msra.mxu1 %v4528_v16  ;;  %4172 = vmatprep.subr.bf16.mxu0 %v4732_v1  ;;  %v4570_v16 = vld [vmem:[%s5879_s1 + $0x1e8] sm:$0xff]  }
 0x114   : > { %4192 = vmatprep.subr.bf16.mxu1 %v4732_v1  ;;  %4186 = vmatprep.mubr.msk.bf16.mxu0 %vm4733_vm0, %v4732_v1 }
 0x115   : > { %4206 = vmatprep.mubr.msk.bf16.mxu1 %vm4733_vm0, %v4732_v1 }
 0x116   : > { %4173 = vmatpush3.bf16.msra.mxu0 %v4529_v18 }
 0x117   : > { %4193 = vmatpush3.bf16.msra.mxu1 %v4530_v19  ;;  %4174 = vmatprep.subr.bf16.mxu0 %v4732_v1 }
 0x118   : > { %4194 = vmatprep.subr.bf16.mxu1 %v4732_v1 }
 0x11a   : > { %4175 = vmatpush3.bf16.msra.mxu0 %v4531_v20 }
 0x11b   : > { %4195 = vmatpush3.bf16.msra.mxu1 %v4532_v21  ;;  %4176 = vmatprep.subr.bf16.mxu0 %v4732_v1 }
 0x11c   : > { %4196 = vmatprep.subr.bf16.mxu1 %v4732_v1 }
 0x11e   : > { %4177 = vmatpush3.bf16.msra.mxu0 %v4533_v22 }
 0x11f   : > { %4197 = vmatpush3.bf16.msra.mxu1 %v4534_v23  ;;  %4178 = vmatprep.subr.bf16.mxu0 %v4732_v1 }
 0x120   : > { %4198 = vmatprep.subr.bf16.mxu1 %v4732_v1 }
 0x122   : > { %4179 = vmatpush3.bf16.msra.mxu0 %v4535_v24 }
 0x123   : > { %4199 = vmatpush3.bf16.msra.mxu1 %v4536_v25  ;;  %4180 = vmatprep.subr.bf16.mxu0 %v4732_v1  ;;  %v4571_v25 = vld [vmem:[%s5879_s1 + $0x5b0] sm:$0xff]  }
 0x124   : > { %v555_v27 = vpop.f32.mrb[4].mxu0  ;;  %4200 = vmatprep.subr.bf16.mxu1 %v4732_v1 }
 0x125   : > { %v561_v28 = vpack.c.bf16 %v555_v27, %v555_v27  ;;  %v662_v29 = vpop.f32.mrb[4].mxu1  ;;  %v3908_v30 = vpop.f32.mrb[5].mxu0  ;;  %v4572_v27 = vld [vmem:[%s5879_s1 + $0x1f0] sm:$0xff]  }
 0x126   : > { %v668_v31 = vpack.c.bf16 %v662_v29, %v662_v29  ;;  %v3928_v32 = vpop.f32.mrb[5].mxu1  ;;  %v558_v33 = vpop.f32.mrb[6].mxu0  ;;  %4181 = vmatpush3.bf16.msra.mxu0 %v4537_v17  ;;  %v4573_v29 = vld [vmem:[%s5879_s1 + $0x5b8] sm:$0xff]  }
 0x127   : > { %562 = vst.msk [vmem:[%s5467_s11] sm:$0xf] %vm347_vm1, %v561_v28  ;;  %v665_v35 = vpop.f32.mrb[6].mxu1  ;;  %4201 = vmatpush3.bf16.msra.mxu1 %v4538_v26  ;;  %v3909_v36 = vpop.f32.mrb[7].mxu0  ;;  %4182 = vmatprep.subr.bf16.mxu0 %v4732_v1  ;;  %v4574_v30 = vld [vmem:[%s5879_s1 + $0x1f8] sm:$0xff]   ;;  %v4576_v32 = vld [vmem:[%s5879_s1 + $0x5c0] sm:$0xff]  }
 0x128   : > { %3119 = vst.msk [vmem:[%s5387_s6 + $0x4] sm:$0xf] %vm347_vm1, %v668_v31  ;;  %v3929_v39 = vpop.f32.mrb[7].mxu1  ;;  %4202 = vmatprep.subr.bf16.mxu1 %v4732_v1  ;;  %v4575_v31 = vld [vmem:[%s5879_s1 + $0x3c0] sm:$0xff]   ;;  %v4577_v33 = vld [vmem:[%s5879_s1 + $0x3c8] sm:$0xff]   ;;  %v4579_v35 = vld [vmem:[%s5879_s1 + $0x3d0] sm:$0xff]  }
 0x129   : > { %v4580_v36 = vld [vmem:[%s5879_s1 + $0x5d0] sm:$0xff]   ;;  %v4582_v39 = vld [vmem:[%s5879_s1 + $0x5d8] sm:$0xff]  }
 0x12a   : > { %4183 = vmatpush3.bf16.msra.mxu0 %v4539_v34  ;;  %v4578_v34 = vld [vmem:[%s5879_s1 + $0x5c8] sm:$0xff]  }
 0x12b   : > { %4203 = vmatpush3.bf16.msra.mxu1 %v4540_v38  ;;  %4184 = vmatprep.subr.bf16.mxu0 %v4732_v1  ;;  %v4581_v38 = vld [vmem:[%s5879_s1 + $0x3d8] sm:$0xff]  }
 0x12c   : > { %4204 = vmatprep.subr.bf16.mxu1 %v4732_v1 }
 0x12e   : > { %4185 = vmatpush3.bf16.msra.mxu0 %v4541_v40  ;;  %v4583_v40 = vld [vmem:[%s5879_s1 + $0x3e0] sm:$0xff]  }
 0x12f   : > { %4205 = vmatpush3.bf16.msra.mxu1 %v4542_v41  ;;  %4210 = vmatprep.subr.bf16.mxu0 %v4732_v1  ;;  %v4584_v41 = vld [vmem:[%s5879_s1 + $0x5e0] sm:$0xff]  }
 0x130   : > { %4230 = vmatprep.subr.bf16.mxu1 %v4732_v1 }
 0x131   : > { %4187 = vmatmul.mubr.bf16.vlgmr.msra.gmra.mrb[32].mxu0 %v5260_v37 }
 0x132   : > { %4207 = vmatmul.mubr.bf16.vlgmr.msra.gmra.mrb[32].mxu1 %v5260_v37  ;;  %4211 = vmatpush3.bf16.msra.mxu0 %v4543_v42  ;;  %v4585_v42 = vld [vmem:[%s5879_s1 + $0x3e8] sm:$0xff]  }
 0x133   : > { %4231 = vmatpush3.bf16.msra.mxu1 %v4544_v43  ;;  %4212 = vmatprep.subr.bf16.mxu0 %v4732_v1  ;;  %v4586_v43 = vld [vmem:[%s5879_s1 + $0x5e8] sm:$0xff]  }
 0x134   : > { %4232 = vmatprep.subr.bf16.mxu1 %v4732_v1  ;;  %4226 = vmatprep.mubr.msk.bf16.mxu0 %vm4733_vm0, %v4732_v1 }
 0x135   : > { %4246 = vmatprep.mubr.msk.bf16.mxu1 %vm4733_vm0, %v4732_v1 }
 0x136   : > { %4213 = vmatpush3.bf16.msra.mxu0 %v4545_v44 }
 0x137   : > { %4233 = vmatpush3.bf16.msra.mxu1 %v4546_v45  ;;  %4214 = vmatprep.subr.bf16.mxu0 %v4732_v1 }
 0x138   : > { %4234 = vmatprep.subr.bf16.mxu1 %v4732_v1 }
 0x13a   : > { %4215 = vmatpush3.bf16.msra.mxu0 %v4547_v46 }
 0x13b   : > { %4235 = vmatpush3.bf16.msra.mxu1 %v4548_v47  ;;  %4216 = vmatprep.subr.bf16.mxu0 %v4732_v1 }
 0x13c   : > { %4236 = vmatprep.subr.bf16.mxu1 %v4732_v1 }
 0x13e   : > { %4217 = vmatpush3.bf16.msra.mxu0 %v4549_v48 }
 0x13f   : > { %4237 = vmatpush3.bf16.msra.mxu1 %v4550_v49  ;;  %4218 = vmatprep.subr.bf16.mxu0 %v4732_v1 }
 0x140   : > { %4238 = vmatprep.subr.bf16.mxu1 %v4732_v1 }
 0x142   : > { %4219 = vmatpush3.bf16.msra.mxu0 %v4551_v50 }
 0x143   : > { %4239 = vmatpush3.bf16.msra.mxu1 %v4552_v51  ;;  %4220 = vmatprep.subr.bf16.mxu0 %v4732_v1  ;;  %v4587_v51 = vld [vmem:[%s5879_s1 + $0x3f0] sm:$0xff]  }
 0x144   : > { %v770_v54 = vpop.f32.mrb[8].mxu0  ;;  %4240 = vmatprep.subr.bf16.mxu1 %v4732_v1 }
 0x145   : > { %v776_v55 = vpack.c.bf16 %v770_v54, %v770_v54  ;;  %v878_v56 = vpop.f32.mrb[8].mxu1  ;;  %v3948_v57 = vpop.f32.mrb[9].mxu0  ;;  %v4588_v54 = vld [vmem:[%s5879_s1 + $0x5f0] sm:$0xff]  }
 0x146   : > { %v884_v58 = vpack.c.bf16 %v878_v56, %v878_v56  ;;  %v3968_v59 = vpop.f32.mrb[9].mxu1  ;;  %v773_v60 = vpop.f32.mrb[10].mxu0  ;;  %4221 = vmatpush3.bf16.msra.mxu0 %v4553_v52  ;;  %v4589_v56 = vld [vmem:[%s5879_s1 + $0x3f8] sm:$0xff]  }
 0x147   : > { %3144 = vst.msk [vmem:[%s5396_s10 + $0x4] sm:$0xf] %vm347_vm1, %v776_v55  ;;  %v881_v62 = vpop.f32.mrb[10].mxu1  ;;  %4241 = vmatpush3.bf16.msra.mxu1 %v4554_v53  ;;  %v3949_v63 = vpop.f32.mrb[11].mxu0  ;;  %4222 = vmatprep.subr.bf16.mxu0 %v4732_v1  ;;  %v4590_v57 = vld [vmem:[%s5879_s1 + $0x5f8] sm:$0xff]  }
 0x148   : > { %3169 = vst.msk [vmem:[%s5467_s11 + $0x4] sm:$0xf] %vm347_vm1, %v884_v58  ;;  %v3969_v2 = vpop.f32.mrb[11].mxu1  ;;  %4242 = vmatprep.subr.bf16.mxu1 %v4732_v1 }
 0x14a   : > { %4223 = vmatpush3.bf16.msra.mxu0 %v4555_v61 }
 0x14b   : > { %4243 = vmatpush3.bf16.msra.mxu1 %v4556_v0  ;;  %4224 = vmatprep.subr.bf16.mxu0 %v4732_v1 }
 0x14c   : > { %4244 = vmatprep.subr.bf16.mxu1 %v4732_v1 }
 0x14e   : > { %4225 = vmatpush3.bf16.msra.mxu0 %v4557_v3 }
 0x14f   : > { %4245 = vmatpush3.bf16.msra.mxu1 %v4558_v4  ;;  %4250 = vmatprep.subr.bf16.mxu0 %v4732_v1 }
 0x150   : > { %4270 = vmatprep.subr.bf16.mxu1 %v4732_v1 }
 0x151   : > { %4227 = vmatmul.mubr.bf16.vlgmr.msra.gmra.mrb[36].mxu0 %v5260_v37 }
 0x152   : > { %4247 = vmatmul.mubr.bf16.vlgmr.msra.gmra.mrb[36].mxu1 %v5260_v37  ;;  %4251 = vmatpush3.bf16.msra.mxu0 %v4559_v5 }
 0x153   : > { %4271 = vmatpush3.bf16.msra.mxu1 %v4560_v6  ;;  %4252 = vmatprep.subr.bf16.mxu0 %v4732_v1 }
 0x154   : > { %4272 = vmatprep.subr.bf16.mxu1 %v4732_v1  ;;  %4266 = vmatprep.mubr.msk.bf16.mxu0 %vm4733_vm0, %v4732_v1 }
 0x155   : > { %4286 = vmatprep.mubr.msk.bf16.mxu1 %vm4733_vm0, %v4732_v1 }
 0x156   : > { %4253 = vmatpush3.bf16.msra.mxu0 %v4561_v7 }
 0x157   : > { %4273 = vmatpush3.bf16.msra.mxu1 %v4562_v8  ;;  %4254 = vmatprep.subr.bf16.mxu0 %v4732_v1 }
 0x158   : > { %4274 = vmatprep.subr.bf16.mxu1 %v4732_v1 }
 0x15a   : > { %4255 = vmatpush3.bf16.msra.mxu0 %v4563_v9 }
 0x15b   : > { %4275 = vmatpush3.bf16.msra.mxu1 %v4564_v10  ;;  %4256 = vmatprep.subr.bf16.mxu0 %v4732_v1 }
 0x15c   : > { %4276 = vmatprep.subr.bf16.mxu1 %v4732_v1 }
 0x15e   : > { %4257 = vmatpush3.bf16.msra.mxu0 %v4565_v11 }
 0x15f   : > { %4277 = vmatpush3.bf16.msra.mxu1 %v4566_v12  ;;  %4258 = vmatprep.subr.bf16.mxu0 %v4732_v1 }
 0x160   : > { %4278 = vmatprep.subr.bf16.mxu1 %v4732_v1 }
 0x162   : > { %4259 = vmatpush3.bf16.msra.mxu0 %v4567_v13 }
 0x163   : > { %4279 = vmatpush3.bf16.msra.mxu1 %v4568_v14  ;;  %4260 = vmatprep.subr.bf16.mxu0 %v4732_v1 }
 0x164   : > { %v986_v18 = vpop.f32.mrb[12].mxu0  ;;  %4280 = vmatprep.subr.bf16.mxu1 %v4732_v1 }
 0x165   : > { %v992_v19 = vpack.c.bf16 %v986_v18, %v986_v18  ;;  %v1094_v20 = vpop.f32.mrb[12].mxu1  ;;  %v3988_v21 = vpop.f32.mrb[13].mxu0 }
 0x166   : > { %v1100_v22 = vpack.c.bf16 %v1094_v20, %v1094_v20  ;;  %v4008_v23 = vpop.f32.mrb[13].mxu1  ;;  %v989_v24 = vpop.f32.mrb[14].mxu0  ;;  %4261 = vmatpush3.bf16.msra.mxu0 %v4569_v15 }
 0x167   : > { %3194 = vst.msk [vmem:[%s5387_s6 + $0x8] sm:$0xf] %vm347_vm1, %v992_v19  ;;  %v1097_v17 = vpop.f32.mrb[14].mxu1  ;;  %4281 = vmatpush3.bf16.msra.mxu1 %v4570_v16  ;;  %v3989_v26 = vpop.f32.mrb[15].mxu0  ;;  %4262 = vmatprep.subr.bf16.mxu0 %v4732_v1 }
 0x168   : > { %3219 = vst.msk [vmem:[%s5396_s10 + $0x8] sm:$0xf] %vm347_vm1, %v1100_v22  ;;  %v4009_v28 = vpop.f32.mrb[15].mxu1  ;;  %4282 = vmatprep.subr.bf16.mxu1 %v4732_v1 }
 0x16a   : > { %4263 = vmatpush3.bf16.msra.mxu0 %v4571_v25 }
 0x16b   : > { %4283 = vmatpush3.bf16.msra.mxu1 %v4572_v27  ;;  %4264 = vmatprep.subr.bf16.mxu0 %v4732_v1 }
 0x16c   : > { %4284 = vmatprep.subr.bf16.mxu1 %v4732_v1 }
 0x16e   : > { %4265 = vmatpush3.bf16.msra.mxu0 %v4573_v29 }
 0x16f   : > { %4285 = vmatpush3.bf16.msra.mxu1 %v4574_v30  ;;  %4290 = vmatprep.subr.bf16.mxu0 %v4732_v1 }
 0x170   : > { %4310 = vmatprep.subr.bf16.mxu1 %v4732_v1 }
 0x171   : > { %4267 = vmatmul.mubr.bf16.vlgmr.msra.gmra.mrb[40].mxu0 %v5260_v37 }
 0x172   : > { %4287 = vmatmul.mubr.bf16.vlgmr.msra.gmra.mrb[40].mxu1 %v5260_v37  ;;  %4291 = vmatpush3.bf16.msra.mxu0 %v4575_v31 }
 0x173   : > { %4311 = vmatpush3.bf16.msra.mxu1 %v4576_v32  ;;  %4292 = vmatprep.subr.bf16.mxu0 %v4732_v1 }
 0x174   : > { %4312 = vmatprep.subr.bf16.mxu1 %v4732_v1  ;;  %4306 = vmatprep.mubr.msk.bf16.mxu0 %vm4733_vm0, %v4732_v1 }
 0x175   : > { %4326 = vmatprep.mubr.msk.bf16.mxu1 %vm4733_vm0, %v4732_v1 }
 0x176   : > { %4293 = vmatpush3.bf16.msra.mxu0 %v4577_v33 }
 0x177   : > { %4313 = vmatpush3.bf16.msra.mxu1 %v4578_v34  ;;  %4294 = vmatprep.subr.bf16.mxu0 %v4732_v1 }
 0x178   : > { %4314 = vmatprep.subr.bf16.mxu1 %v4732_v1 }
 0x17a   : > { %4295 = vmatpush3.bf16.msra.mxu0 %v4579_v35 }
 0x17b   : > { %4315 = vmatpush3.bf16.msra.mxu1 %v4580_v36  ;;  %4296 = vmatprep.subr.bf16.mxu0 %v4732_v1 }
 0x17c   : > { %4316 = vmatprep.subr.bf16.mxu1 %v4732_v1 }
 0x17e   : > { %4297 = vmatpush3.bf16.msra.mxu0 %v4581_v38 }
 0x17f   : > { %4317 = vmatpush3.bf16.msra.mxu1 %v4582_v39  ;;  %4298 = vmatprep.subr.bf16.mxu0 %v4732_v1 }
 0x180   : > { %4318 = vmatprep.subr.bf16.mxu1 %v4732_v1 }
 0x182   : > { %4299 = vmatpush3.bf16.msra.mxu0 %v4583_v40 }
 0x183   : > { %4319 = vmatpush3.bf16.msra.mxu1 %v4584_v41  ;;  %4300 = vmatprep.subr.bf16.mxu0 %v4732_v1 }
 0x184   : > { %v1202_v44 = vpop.f32.mrb[16].mxu0  ;;  %4320 = vmatprep.subr.bf16.mxu1 %v4732_v1 }
 0x185   : > { %v1208_v45 = vpack.c.bf16 %v1202_v44, %v1202_v44  ;;  %v1310_v46 = vpop.f32.mrb[16].mxu1  ;;  %v4028_v47 = vpop.f32.mrb[17].mxu0 }
 0x186   : > { %v1316_v48 = vpack.c.bf16 %v1310_v46, %v1310_v46  ;;  %v4048_v49 = vpop.f32.mrb[17].mxu1  ;;  %v1205_v50 = vpop.f32.mrb[18].mxu0  ;;  %4301 = vmatpush3.bf16.msra.mxu0 %v4585_v42 }
 0x187   : > { %3244 = vst.msk [vmem:[%s5467_s11 + $0x8] sm:$0xf] %vm347_vm1, %v1208_v45  ;;  %v1313_v52 = vpop.f32.mrb[18].mxu1  ;;  %4321 = vmatpush3.bf16.msra.mxu1 %v4586_v43  ;;  %v4029_v53 = vpop.f32.mrb[19].mxu0  ;;  %4302 = vmatprep.subr.bf16.mxu0 %v4732_v1 }
 0x188   : > { %3269 = vst.msk [vmem:[%s5387_s6 + $0xc] sm:$0xf] %vm347_vm1, %v1316_v48  ;;  %v4049_v55 = vpop.f32.mrb[19].mxu1  ;;  %4322 = vmatprep.subr.bf16.mxu1 %v4732_v1 }
 0x18a   : > { %4303 = vmatpush3.bf16.msra.mxu0 %v4587_v51 }
 0x18b   : > { %4323 = vmatpush3.bf16.msra.mxu1 %v4588_v54  ;;  %4304 = vmatprep.subr.bf16.mxu0 %v4732_v1 }
 0x18c   : > { %4324 = vmatprep.subr.bf16.mxu1 %v4732_v1 }
 0x18e   : > { %4305 = vmatpush3.bf16.msra.mxu0 %v4589_v56 }
 0x18f   : > { %4325 = vmatpush3.bf16.msra.mxu1 %v4590_v57 }
 0x191   : > { %4307 = vmatmul.mubr.bf16.vlgmr.msra.gmra.mrb[44].mxu0 %v5260_v37 }
 0x192   : > { %4327 = vmatmul.mubr.bf16.vlgmr.msra.gmra.mrb[44].mxu1 %v5260_v37 }
 0x1a4   : > { %v1418_v58 = vpop.f32.mrb[20].mxu0 }
 0x1a5   : > { %v1424_v59 = vpack.c.bf16 %v1418_v58, %v1418_v58  ;;  %v1526_v60 = vpop.f32.mrb[20].mxu1  ;;  %v4068_v61 = vpop.f32.mrb[21].mxu0 }
 0x1a6   : > { %v1532_v62 = vpack.c.bf16 %v1526_v60, %v1526_v60  ;;  %v4088_v63 = vpop.f32.mrb[21].mxu1  ;;  %v1421_v0 = vpop.f32.mrb[22].mxu0 }
 0x1a7   : > { %3294 = vst.msk [vmem:[%s5396_s10 + $0xc] sm:$0xf] %vm347_vm1, %v1424_v59  ;;  %v1529_v2 = vpop.f32.mrb[22].mxu1  ;;  %v4069_v3 = vpop.f32.mrb[23].mxu0 }
 0x1a8   : > { %3319 = vst.msk [vmem:[%s5467_s11 + $0xc] sm:$0xf] %vm347_vm1, %v1532_v62  ;;  %v4089_v1 = vpop.f32.mrb[23].mxu1 }
 0x1c4   : > { %v1634_v4 = vpop.f32.mrb[24].mxu0 }
 0x1c5   : > { %v1640_v5 = vpack.c.bf16 %v1634_v4, %v1634_v4  ;;  %v1742_v6 = vpop.f32.mrb[24].mxu1  ;;  %v4108_v37 = vpop.f32.mrb[25].mxu0 }
 0x1c6   : > { %v1748_v7 = vpack.c.bf16 %v1742_v6, %v1742_v6  ;;  %v4128_v8 = vpop.f32.mrb[25].mxu1  ;;  %v1637_v9 = vpop.f32.mrb[26].mxu0 }
 0x1c7   : > { %3344 = vst.msk [vmem:[%s5387_s6 + $0x10] sm:$0xf] %vm347_vm1, %v1640_v5  ;;  %v1745_v10 = vpop.f32.mrb[26].mxu1  ;;  %v4109_v11 = vpop.f32.mrb[27].mxu0 }
 0x1c8   : > { %3369 = vst.msk [vmem:[%s5396_s10 + $0x10] sm:$0xf] %vm347_vm1, %v1748_v7  ;;  %v4129_v12 = vpop.f32.mrb[27].mxu1 }
 0x1e4   : > { %v1850_v13 = vpop.f32.mrb[28].mxu0 }
 0x1e5   : > { %v1856_v14 = vpack.c.bf16 %v1850_v13, %v1850_v13  ;;  %v1958_v15 = vpop.f32.mrb[28].mxu1  ;;  %v4148_v16 = vpop.f32.mrb[29].mxu0 }
 0x1e6   : > { %v1964_v18 = vpack.c.bf16 %v1958_v15, %v1958_v15  ;;  %v4168_v19 = vpop.f32.mrb[29].mxu1  ;;  %v1853_v20 = vpop.f32.mrb[30].mxu0 }
 0x1e7   : > { %3394 = vst.msk [vmem:[%s5467_s11 + $0x10] sm:$0xf] %vm347_vm1, %v1856_v14  ;;  %v1961_v21 = vpop.f32.mrb[30].mxu1  ;;  %v4149_v22 = vpop.f32.mrb[31].mxu0 }
 0x1e8   : > { %3419 = vst.msk [vmem:[%s5387_s6 + $0x14] sm:$0xf] %vm347_vm1, %v1964_v18  ;;  %v4169_v23 = vpop.f32.mrb[31].mxu1 }
 0x204   : > { %v2066_v24 = vpop.f32.mrb[32].mxu0 }
 0x205   : > { %v2072_v25 = vpack.c.bf16 %v2066_v24, %v2066_v24  ;;  %v2174_v17 = vpop.f32.mrb[32].mxu1  ;;  %v4188_v26 = vpop.f32.mrb[33].mxu0 }
 0x206   : > { %v2180_v27 = vpack.c.bf16 %v2174_v17, %v2174_v17  ;;  %v4208_v28 = vpop.f32.mrb[33].mxu1  ;;  %v2069_v29 = vpop.f32.mrb[34].mxu0 }
 0x207   : > { %3444 = vst.msk [vmem:[%s5396_s10 + $0x14] sm:$0xf] %vm347_vm1, %v2072_v25  ;;  %v2177_v30 = vpop.f32.mrb[34].mxu1  ;;  %v4189_v31 = vpop.f32.mrb[35].mxu0 }
 0x208   : > { %3469 = vst.msk [vmem:[%s5467_s11 + $0x14] sm:$0xf] %vm347_vm1, %v2180_v27  ;;  %v4209_v32 = vpop.f32.mrb[35].mxu1 }
 0x224   : > { %v2282_v33 = vpop.f32.mrb[36].mxu0 }
 0x225   : > { %v2288_v34 = vpack.c.bf16 %v2282_v33, %v2282_v33  ;;  %v2390_v35 = vpop.f32.mrb[36].mxu1  ;;  %v4228_v36 = vpop.f32.mrb[37].mxu0 }
 0x226   : > { %v2396_v38 = vpack.c.bf16 %v2390_v35, %v2390_v35  ;;  %v4248_v39 = vpop.f32.mrb[37].mxu1  ;;  %v2285_v40 = vpop.f32.mrb[38].mxu0 }
 0x227   : > { %3494 = vst.msk [vmem:[%s5387_s6 + $0x18] sm:$0xf] %vm347_vm1, %v2288_v34  ;;  %v2393_v41 = vpop.f32.mrb[38].mxu1  ;;  %v4229_v42 = vpop.f32.mrb[39].mxu0 }
 0x228   : > { %3519 = vst.msk [vmem:[%s5396_s10 + $0x18] sm:$0xf] %vm347_vm1, %v2396_v38  ;;  %v4249_v43 = vpop.f32.mrb[39].mxu1 }
 0x244   : > { %v2498_v44 = vpop.f32.mrb[40].mxu0 }
 0x245   : > { %v2504_v45 = vpack.c.bf16 %v2498_v44, %v2498_v44  ;;  %v2606_v46 = vpop.f32.mrb[40].mxu1  ;;  %v4268_v47 = vpop.f32.mrb[41].mxu0 }
 0x246   : > { %v2612_v48 = vpack.c.bf16 %v2606_v46, %v2606_v46  ;;  %v4288_v49 = vpop.f32.mrb[41].mxu1  ;;  %v2501_v50 = vpop.f32.mrb[42].mxu0 }
 0x247   : > { %3544 = vst.msk [vmem:[%s5467_s11 + $0x18] sm:$0xf] %vm347_vm1, %v2504_v45  ;;  %v2609_v51 = vpop.f32.mrb[42].mxu1  ;;  %v4269_v52 = vpop.f32.mrb[43].mxu0 }
 0x248   : > { %3569 = vst.msk [vmem:[%s5387_s6 + $0x1c] sm:$0xf] %vm347_vm1, %v2612_v48  ;;  %v4289_v53 = vpop.f32.mrb[43].mxu1 }
 0x249   : > { %4605 = shalt.err (!%p4602_p5)
}
 0x24a   : > { %s4606_s9 = scalar_lea.hbm %s5738_s30, 512  ;;  %s4610_s26 = scalar_lea.hbm %s5880_s2, 1024 }
 0x24b   : > { %p4607_p6 = scmp.ne.s32.totalorder %s5738_s30, %s4606_s9  ;;  %p4611_p10 = scmp.lt.u32.totalorder %s5738_s30, %s5880_s2 }
 0x24c   : > { %p4612_p11 = scmp.lt.u32.totalorder %s4610_s26, %s4606_s9  ;;  %p4614_p13 = scmp.lt.u32.totalorder %s4606_s9, %s5738_s30 }
 0x24d   : > { %p4608_p7 = pnand %p4607_p6, %p4806_p4 }
 0x24e   : > { %p4613_p12 = por %p4612_p11, %p4611_p10 }
 0x24f   : > { %p4609_p9 = pneg %p4608_p7 }
 0x250   : > { %p4615_p0 = por %p4614_p13, %p4613_p12 }
 0x252   : > { %p4616_p1 = pnand %p4615_p0, %p4609_p9 }
 0x254   : > { %4619 = shalt.err (!%p4616_p1)
}
 0x255   : > { %s4735_s5 = smov 64   ;;  %s4736_s8 = smov 4  }
 0x256   : > { %4330 = dma.vmem_to_hbm [thread:$0]  (%p4806_p4), %s5740_s24, 512, %s5738_s30, %s5748_s18, %s4735_s5, %s4735_s5, %s4736_s8  }
 0x257   : > { %s5777_s12 = sand.u32 1, %s3030_s21   ;;  %s2873_s9 = sshll.u32 %s5396_s10, 4  ;;  %s5787_s9 = int_to_ptr.vmem [resolvable:$true] %s2873_s9 }
 0x258   : > { %s2890_s6 = sshll.u32 %s5467_s11, 4  ;;  %s5785_s29 = scalar_lea.hbm %s5881_s3, %s5731_s13  ;;  %s5789_s6 = int_to_ptr.vmem [resolvable:$true] %s2890_s6 }
 0x259   : > { %s5795_s30 = scalar_lea.hbm %s5882_s4, %s5731_s13  ;;  %s2837_s18 = scalar_lea.sflag [#allocation5], %s5777_s12 }
 0x25a   : > { %s4620_s7 = scalar_lea.vmem %s5787_s9, 512  ;;  %s4737_s14 = smov [#allocation4]  }
 0x25b   : > { %p4621_p2 = scmp.ne.s32.totalorder %s5787_s9, %s4620_s7  ;;  %s4624_s26 = sshll.u32 %s4737_s14, 4  ;;  %s4625_s26 = int_to_ptr.vmem [resolvable:$false] %s4624_s26 }
 0x25c   : > { %s4626_s21 = scalar_lea.vmem %s4625_s26, 1024  ;;  %p4627_p6 = scmp.lt.s32.totalorder %s5787_s9, %s4625_s26 }
 0x25d   : > { %p4622_p3 = pnand %p4621_p2, %p4806_p4  ;;  %p4628_p7 = scmp.lt.s32.totalorder %s4626_s21, %s4620_s7 }
 0x25f   : > { %p4623_p5 = pneg %p4622_p3  ;;  %p4629_p9 = por %p4628_p7, %p4627_p6 }
 0x261   : > { %p4630_p10 = pnand %p4629_p9, %p4623_p5 }
 0x264   : > { %v2714_v54 = vpop.f32.mrb[44].mxu0 }
 0x265   : > { %v2720_v55 = vpack.c.bf16 %v2714_v54, %v2714_v54  ;;  %v2822_v56 = vpop.f32.mrb[44].mxu1  ;;  %v4308_v57 = vpop.f32.mrb[45].mxu0 }
 0x266   : > { %v2828_v58 = vpack.c.bf16 %v2822_v56, %v2822_v56  ;;  %v4328_v59 = vpop.f32.mrb[45].mxu1  ;;  %v2717_v60 = vpop.f32.mrb[46].mxu0 }
 0x267   : > { %3594 = vst.msk [vmem:[%s5396_s10 + $0x1c] sm:$0xf] %vm347_vm1, %v2720_v55  ;;  %v2825_v61 = vpop.f32.mrb[46].mxu1  ;;  %v4309_v62 = vpop.f32.mrb[47].mxu0 }
 0x268   : > { %3619 = vst.msk [vmem:[%s5467_s11 + $0x1c] sm:$0xf] %vm347_vm1, %v2828_v58  ;;  %v4329_v63 = vpop.f32.mrb[47].mxu1 }
 0x269   : > { %4633 = shalt.err (!%p4630_p10)
}
 0x26a   : > { %s4634_s10 = scalar_lea.hbm %s5785_s29, 512  ;;  %s4638_s24 = scalar_lea.hbm %s5881_s3, 1024 }
 0x26b   : > { %p4635_p11 = scmp.ne.s32.totalorder %s5785_s29, %s4634_s10  ;;  %p4639_p0 = scmp.lt.u32.totalorder %s5785_s29, %s5881_s3 }
 0x26c   : > { %p4640_p1 = scmp.lt.u32.totalorder %s4638_s24, %s4634_s10  ;;  %p4642_p3 = scmp.lt.u32.totalorder %s4634_s10, %s5785_s29 }
 0x26d   : > { %p4636_p12 = pnand %p4635_p11, %p4806_p4 }
 0x26e   : > { %p4641_p2 = por %p4640_p1, %p4639_p0 }
 0x26f   : > { %p4637_p13 = pneg %p4636_p12 }
 0x270   : > { %p4643_p5 = por %p4642_p3, %p4641_p2 }
 0x272   : > { %p4644_p6 = pnand %p4643_p5, %p4637_p13 }
 0x274   : > { %4647 = shalt.err (!%p4644_p6)
}
 0x275   : > { %4331 = dma.vmem_to_hbm [thread:$0]  (%p4806_p4), %s5787_s9, 512, %s5785_s29, %s2837_s18, %s4735_s5, %s4735_s5, %s4736_s8  }
 0x276   : > { %s4648_s7 = scalar_lea.vmem %s5789_s6, 512  ;;  %s4738_s21 = smov [#allocation6]  }
 0x277   : > { %p4649_p7 = scmp.ne.s32.totalorder %s5789_s6, %s4648_s7  ;;  %s4652_s10 = sshll.u32 %s4738_s21, 4  ;;  %s4653_s10 = int_to_ptr.vmem [resolvable:$false] %s4652_s10 }
 0x278   : > { %s4654_s11 = scalar_lea.vmem %s4653_s10, 1024  ;;  %p4655_p11 = scmp.lt.s32.totalorder %s5789_s6, %s4653_s10 }
 0x279   : > { %p4650_p9 = pnand %p4649_p7, %p4806_p4  ;;  %p4656_p12 = scmp.lt.s32.totalorder %s4654_s11, %s4648_s7 }
 0x27b   : > { %p4651_p10 = pneg %p4650_p9  ;;  %p4657_p13 = por %p4656_p12, %p4655_p11 }
 0x27d   : > { %p4658_p0 = pnand %p4657_p13, %p4651_p10 }
 0x27f   : > { %4661 = shalt.err (!%p4658_p0)
}
 0x280   : > { %s4662_s9 = scalar_lea.hbm %s5795_s30, 512  ;;  %s4666_s24 = scalar_lea.hbm %s5882_s4, 1024 }
 0x281   : > { %p4663_p1 = scmp.ne.s32.totalorder %s5795_s30, %s4662_s9  ;;  %p4667_p5 = scmp.lt.u32.totalorder %s5795_s30, %s5882_s4 }
 0x282   : > { %p4668_p6 = scmp.lt.u32.totalorder %s4666_s24, %s4662_s9  ;;  %p4670_p9 = scmp.lt.u32.totalorder %s4662_s9, %s5795_s30 }
 0x283   : > { %p4664_p2 = pnand %p4663_p1, %p4806_p4 }
 0x284   : > { %p4669_p7 = por %p4668_p6, %p4667_p5 }
 0x285   : > { %p4665_p3 = pneg %p4664_p2 }
 0x286   : > { %p4671_p10 = por %p4670_p9, %p4669_p7 }
 0x288   : > { %p4672_p11 = pnand %p4671_p10, %p4665_p3 }
 0x28a   : > { %4675 = shalt.err (!%p4672_p11)
}
 0x28b   : > { %4332 = dma.vmem_to_hbm [thread:$0]  (%p4806_p4), %s5789_s6, 512, %s5795_s30, %s2837_s18, %s4735_s5, %s4735_s5, %s4736_s8  }
 0x28c PF: > { %p4346_p12 = scmp.ge.s32.totalorder %s4730_s20, 2  ;;  %s2905_s7 = sand.u32 1, %s4710_s15  }
 0x28d   : > { %s2906_s21 = scalar_lea.sflag [#allocation3], %s2905_s7 }
 0x28e   : > { %p4337_p13 = pnand %p4346_p12, %p4815_p8 }
 0x290   : > { %4701 = dma.done.wait (!%p4337_p13), %s2906_s21, 512  }
 0x291   : > { %4703 = vsyncadd (!%p4337_p13), %s2906_s21, 4294966784  ;;  %s2914_s25 = sand.u32 1, %s3031_s22  }
 0x292   : > { %s2915_s10 = scalar_lea.sflag [#allocation5], %s2914_s25 }
 0x293   : > { %4705 = dma.done.wait (!%p4337_p13), %s2915_s10, 1024  }
 0x294   : > { %4707 = vsyncadd (!%p4337_p13), %s2915_s10, 4294966272  ;;  %s21_s20 = sadd.s32 1, %s4730_s20   ;;  %s5885_s15 = smov %s4714_s16 }
 0x295   : > { %p18_p4 = scmp.ge.s32.totalorder %s21_s20, 4   ;;  %s5886_s16 = smov %s4718_s17 }
 0x296   : > { %s5887_s17 = smov %s4821_s28  ;;  %s5888_s18 = smov %s4726_s19 }
 0x297   : > { %s5889_s19 = smov %s5891_s23  ;;  %20 = sbr.rel (!%p18_p4) target bundleno = 6 (0x6), region = 139 }
 0x29e   :  { %2929 = vsyncpa [#allocation3], 1 }
 0x29f   :  { %2931 = vsyncpa [#allocation3 + $0x1], 1 }
 0x2a0   :  { %2932 = vsyncpa [#allocation5], 1 }
 0x2a1   :  { %2934 = vsyncpa [#allocation5 + $0x1], 1 }

</bundles_post_ra>
